<compile_context>
chip_gen: v6e
topology: v6e:2x2x1
jax: 0.10.0
libtpu: 0.0.40
codegen_flags: <defaults>
</compile_context>

<pallas_src>
import functools

import jax
import jax.numpy as jnp
import numpy as np
from jax.experimental import pallas as pl
from jax.experimental.pallas import tpu as pltpu

BN_EPS = 1e-5


def _round_up(n, m):
    return ((n + m - 1) // m) * m


def din_kernel(items_ref, target_ref, mask_ref,
               w1m_ref, w1t_ref, p1_ref, w2_ref, p2_ref, w3_ref,
               pooled_ref, attw_ref,
               stats1_ref, bn1_ref, stats2_ref, coef_ref,
               *, total_rows):
    p = pl.program_id(0)          # pass: 0 = BN1 stats, 1 = BN2 stats, 2 = emit
    t = pl.program_id(1)          # batch tile

    items = items_ref[...]                         # [TB, S, E] f32
    tgt = target_ref[...][:, 0, :]                 # [TB, E]    f32
    TB, S, E = items.shape
    H1p = p1_ref.shape[1]
    H2p = p2_ref.shape[1]
    rows = TB * S
    inv_n = 1.0 / float(total_rows)

    # ---- layer 1 (recomputed every pass; merged-K items|interaction matmul) ----
    inter = items * tgt[:, None, :]                                    # f32
    x2e = jnp.concatenate([items, inter], axis=-1).reshape(rows, 2 * E)
    x2e = x2e.astype(jnp.bfloat16)
    z1 = jnp.dot(x2e, w1m_ref[...],
                 preferred_element_type=jnp.float32).reshape(TB, S, H1p)
    h_t = jnp.dot(tgt.astype(jnp.bfloat16), w1t_ref[...],
                  preferred_element_type=jnp.float32)                  # [TB, H1p]
    z1 = jnp.maximum(z1 + h_t[:, None, :] + p1_ref[0:1, :], 0.0)       # ReLU(pre-BN1)
    z1_2d = z1.reshape(rows, H1p)

    def layer2():
        # BN1 (folded scale/shift) + layer-2 linear + ReLU, [rows, H2p] f32.
        h1 = z1_2d * bn1_ref[0:1, :] + bn1_ref[1:2, :]
        z2 = jnp.dot(h1.astype(jnp.bfloat16), w2_ref[...],
                     preferred_element_type=jnp.float32) + p2_ref[0:1, :]
        return jnp.maximum(z2, 0.0)

    # ---- pass 0: accumulate BN1 batch statistics --------------------------------
    @pl.when(p == 0)
    def _():
        @pl.when(t == 0)
        def _():
            stats1_ref[...] = jnp.zeros_like(stats1_ref)
        s = jnp.sum(z1_2d, axis=0, keepdims=True)
        sq = jnp.sum(z1_2d * z1_2d, axis=0, keepdims=True)
        stats1_ref[...] += jnp.concatenate([s, sq], axis=0)

    # ---- pass 1: finalize BN1, accumulate BN2 batch statistics ------------------
    @pl.when(p == 1)
    def _():
        @pl.when(t == 0)
        def _():
            mu = stats1_ref[0:1, :] * inv_n
            var = jnp.maximum(stats1_ref[1:2, :] * inv_n - mu * mu, 0.0)
            scale = jax.lax.rsqrt(var + BN_EPS) * p1_ref[1:2, :]        # * gamma1
            shift = p1_ref[2:3, :] - mu * scale                         # beta1 - mu*scale
            bn1_ref[...] = jnp.concatenate([scale, shift], axis=0)
            stats2_ref[...] = jnp.zeros_like(stats2_ref)
        z2 = layer2()
        s = jnp.sum(z2, axis=0, keepdims=True)
        sq = jnp.sum(z2 * z2, axis=0, keepdims=True)
        stats2_ref[...] += jnp.concatenate([s, sq], axis=0)

    # ---- pass 2: fold BN2 + w3, score, masked softmax, pool ---------------------
    @pl.when(p == 2)
    def _():
        @pl.when(t == 0)
        def _():
            mu2 = stats2_ref[0:1, :] * inv_n
            var2 = jnp.maximum(stats2_ref[1:2, :] * inv_n - mu2 * mu2, 0.0)
            # BN2 affine + w3 folded into one per-lane coefficient; the row-constant
            # terms (-mu2 shift, beta2.w3, b3) are softmax-shift-invariant -> dropped.
            coef_ref[...] = jax.lax.rsqrt(var2 + BN_EPS) * p2_ref[1:2, :] * w3_ref[...]
        z2 = layer2().reshape(TB, S, H2p)
        scores = jnp.sum(z2 * coef_ref[...], axis=-1)                   # [TB, S]
        mask = mask_ref[...][:, 0, :]                                   # [TB, S]
        scores = jnp.where(mask > 0, scores, -1e30)   # finite fill: no NaN on all-masked rows
        m = jnp.max(scores, axis=-1, keepdims=True)
        e = jnp.exp(scores - m)
        attw = e / jnp.sum(e, axis=-1, keepdims=True)  # exact divide: rows sum to 1
        attw_ref[...] = attw[:, None, :]
        # VPU weighted sum (not a batched M=1 MXU matmul).
        pooled_ref[...] = jnp.sum(attw[:, :, None] * items, axis=1)[:, None, :]


def din_attention_pooling(items, target, mask, kparams, *, rows_per_tile=512):
    B, S, E = items.shape
    w1m, w1t, p1, w2, p2, w3 = kparams
    H1p, H2p = w1m.shape[1], w2.shape[1]

    # Batch tile: whole sequences per step so softmax/interaction stay tile-local.
    TB = max(1, min(B, max(1, rows_per_tile // S)))
    while B % TB:
        TB -= 1
    NT = B // TB
    rows = TB * S
    BS = B * S

    # Reshape small per-batch tensors to [B, 1, *] so block shapes satisfy the
    # (8, 128) / full-dim rule for any TB.
    target3 = target.reshape(B, 1, E)
    mask3 = mask.reshape(B, 1, S).astype(jnp.float32)

    grid = (3, NT)  # (pass, batch tile); passes 0/1 accumulate BN stats, pass 2 emits

    def w_spec(shape):
        return pl.BlockSpec(shape, lambda p, t: (0, 0))

    in_specs = [
        pl.BlockSpec((TB, S, E), lambda p, t: (t, 0, 0)),   # items   f32
        pl.BlockSpec((TB, 1, E), lambda p, t: (t, 0, 0)),   # target  f32
        pl.BlockSpec((TB, 1, S), lambda p, t: (t, 0, 0)),   # mask    f32
        w_spec((2 * E, H1p)),                               # w1 merged (items|inter) bf16
        w_spec((E, H1p)),                                   # w1 target block        bf16
        w_spec((3, H1p)),                                   # (b1, gamma1, beta1)    f32
        w_spec((H1p, H2p)),                                 # w2                     bf16
        w_spec((3, H2p)),                                   # (b2, gamma2, beta2)    f32
        w_spec((1, H2p)),                                   # w3                     f32
    ]
    out_specs = (
        pl.BlockSpec((TB, 1, E), lambda p, t: (t, 0, 0)),   # pooled
        pl.BlockSpec((TB, 1, S), lambda p, t: (t, 0, 0)),   # attention weights
    )
    scratch_shapes = [
        pltpu.VMEM((2, H1p), jnp.float32),   # BN1 sum / sum-sq
        pltpu.VMEM((2, H1p), jnp.float32),   # BN1 folded (scale, shift)
        pltpu.VMEM((2, H2p), jnp.float32),   # BN2 sum / sum-sq
        pltpu.VMEM((1, H2p), jnp.float32),   # folded BN2*w3 coefficient
    ]

    # Advisory cost (layer-1 runs 3x, layer-2 runs 2x due to the BN passes).
    flops = int(3 * 2 * BS * (2 * E) * H1p + 3 * 2 * B * E * H1p
                + 2 * 2 * BS * H1p * H2p + 8 * BS * (H1p + H2p) + 6 * BS * E)
    bytes_accessed = int(3 * (BS * E + B * E + B * S) * 4
                         + (2 * E * H1p + E * H1p + H1p * H2p) * 2
                         + (3 * H1p + 3 * H2p + H2p) * 4
                         + (B * E + B * S) * 4)
    cost = pl.CostEstimate(flops=flops, transcendentals=int(BS),
                           bytes_accessed=bytes_accessed)

    # Scoped-VMEM budget sized to the real footprint (capped at v7x's 64 MiB).
    vmem_bytes = int(
        2 * (rows * E + TB * E + TB * S + TB * E + TB * S) * 4    # dbl-buffered tiles in/out
        + (2 * E * H1p + E * H1p + H1p * H2p) * 2                 # bf16 weights
        + (3 * H1p + 3 * H2p + H2p) * 4                           # f32 params
        + (2 * H1p + 2 * H1p + 2 * H2p + H2p) * 4                 # scratch
        + 4 * rows * (2 * E + H1p + H2p) * 4                      # live working set
        + (2 << 20))                                              # headroom
    vmem_bytes = min(vmem_bytes, 64 * 1024 * 1024)

    compiler_params = pltpu.CompilerParams(
        # Both axes 'arbitrary': the pass axis is a sequential dependency and the
        # tile axis carries the shared BN accumulators (see TODO in header for a
        # megacore-parallel variant).
        dimension_semantics=("arbitrary", "arbitrary"),
        vmem_limit_bytes=vmem_bytes,
    )

    kernel = functools.partial(din_kernel, total_rows=BS)
    pooled3, attw3 = pl.pallas_call(
        kernel,
        out_shape=(jax.ShapeDtypeStruct((B, 1, E), jnp.float32),
                   jax.ShapeDtypeStruct((B, 1, S), jnp.float32)),
        grid_spec=pltpu.PrefetchScalarGridSpec(
            num_scalar_prefetch=0, grid=grid,
            in_specs=in_specs, out_specs=out_specs,
            scratch_shapes=scratch_shapes),
        compiler_params=compiler_params,
        cost_estimate=cost,
    )(items, target3, mask3, w1m, w1t, p1, w2, p2, w3)
    return pooled3[:, 0, :], attw3[:, 0, :]


def init_params(key, embedding_dim, hidden_dims=(200, 80)):
    """PyTorch-style deterministic init: W,b ~ U(-1/sqrt(fan_in), 1/sqrt(fan_in))."""
    dims = [3 * embedding_dim] + list(hidden_dims)
    keys = jax.random.split(key, 2 * (len(hidden_dims) + 1))
    params = []
    ki = 0
    in_dim = dims[0]
    for h in hidden_dims:
        bound = 1.0 / np.sqrt(in_dim)
        w = jax.random.uniform(keys[ki], (in_dim, h), jnp.float32, -bound, bound); ki += 1
        b = jax.random.uniform(keys[ki], (1, h), jnp.float32, -bound, bound); ki += 1
        gamma = jnp.ones((1, h), jnp.float32)
        beta = jnp.zeros((1, h), jnp.float32)
        params.extend([w, b, gamma, beta])
        in_dim = h
    bound = 1.0 / np.sqrt(in_dim)
    w3 = jax.random.uniform(keys[ki], (1, in_dim), jnp.float32, -bound, bound); ki += 1
    b3 = jax.random.uniform(keys[ki], (1, 1), jnp.float32, -bound, bound)
    params.extend([w3, b3])
    return tuple(params)


def prepare_params(params, embedding_dim):
    """One-time weight re-layout for the kernel:
       * split w1 by feature block and merge (items|interaction) along K,
       * zero-pad hidden dims to lane multiples of 128,
       * pack (bias, gamma, beta) per layer into one [3, H] f32 array,
       * cast MXU weights to bfloat16.
       b3 is folded away in-kernel (softmax shift invariance) and not passed.
       Padded gamma/beta/bias/weight entries are 0 -> padded lanes stay inert."""
    (w1, b1, g1, be1, w2, b2, g2, be2, w3, b3) = params
    E = embedding_dim
    H1, H2 = w1.shape[1], w2.shape[1]
    H1p, H2p = _round_up(H1, 128), _round_up(H2, 128)

    def padc(a, n):  # zero-pad last dim to n
        return jnp.pad(a, [(0, 0)] * (a.ndim - 1) + [(0, n - a.shape[-1])])

    w1m = padc(jnp.concatenate([w1[:E], w1[2 * E:]], axis=0), H1p).astype(jnp.bfloat16)  # [2E, H1p]
    w1t = padc(w1[E:2 * E], H1p).astype(jnp.bfloat16)                                    # [E,  H1p]
    p1 = jnp.concatenate([padc(b1, H1p), padc(g1, H1p), padc(be1, H1p)], axis=0)         # [3, H1p]
    w2p = jnp.pad(w2, ((0, H1p - H1), (0, H2p - H2))).astype(jnp.bfloat16)               # [H1p, H2p]
    p2 = jnp.concatenate([padc(b2, H2p), padc(g2, H2p), padc(be2, H2p)], axis=0)         # [3, H2p]
    w3p = padc(w3, H2p)                                                                  # [1, H2p] f32
    return (w1m, w1t, p1, w2p, p2, w3p)


def reference(items, target, mask, params):
    """Pure-JAX mirror of the module math (bf16 matmul operands, f32 accumulate)."""
    (w1, b1, g1, be1, w2, b2, g2, be2, w3, b3) = params
    B, S, E = items.shape
    tgt = jnp.broadcast_to(target[:, None, :], (B, S, E))
    x = jnp.concatenate([items, tgt, items * tgt], axis=-1).reshape(B * S, 3 * E)

    def block(x, w, b, g, be):
        h = jnp.dot(x.astype(jnp.bfloat16), w.astype(jnp.bfloat16),
                    preferred_element_type=jnp.float32) + b
        h = jnp.maximum(h, 0.0)
        mu = jnp.mean(h, axis=0, keepdims=True)
        var = jnp.mean((h - mu) ** 2, axis=0, keepdims=True)
        return (h - mu) * jax.lax.rsqrt(var + BN_EPS) * g + be

    h = block(x, w1, b1, g1, be1)
    h = block(h, w2, b2, g2, be2)
    scores = (h @ w3.T + b3).reshape(B, S)
    scores = jnp.where(mask == 0, -jnp.inf, scores)
    attw = jax.nn.softmax(scores, axis=-1)
    pooled = jnp.einsum('bs,bse->be', attw, items)
    return pooled, attw


if __name__ == "__main__":
    B, S, E = 2, 8, 32
    hidden_dims = (200, 80)

    key = jax.random.PRNGKey(0)
    k_items, k_target, k_params = jax.random.split(key, 3)

    items = jax.random.normal(k_items, (B, S, E), jnp.float32)
    target = jax.random.normal(k_target, (B, E), jnp.float32)
    # mask: first batch keeps all 8 positions, second keeps the first 5
    lengths = jnp.array([8, 5], dtype=jnp.int32)
    mask = (jnp.arange(S)[None, :] < lengths[:, None]).astype(jnp.float32)

    params = init_params(k_params, E, hidden_dims)
    kparams = prepare_params(params, E)

    pooled, attw = din_attention_pooling(items, target, mask, kparams)
    pooled = jax.block_until_ready(pooled)
    attw = jax.block_until_ready(attw)

    pooled_ref, attw_ref = reference(items, target, mask, params)
    np.testing.assert_allclose(np.asarray(attw), np.asarray(attw_ref), rtol=5e-3, atol=5e-3)
    np.testing.assert_allclose(np.asarray(pooled), np.asarray(pooled_ref), rtol=5e-3, atol=5e-3)
    assert pooled.shape == (B, E) and attw.shape == (B, S)
    assert np.allclose(np.asarray(attw).sum(-1), 1.0, atol=2e-3)

    print("KERNEL_OK")
</pallas_src>

<mosaic_0001>
module attributes {stable_mosaic.version = 11 : i64} {
  func.func @din_kernel(%arg0: i32, %arg1: i32, %arg2: memref<2x8x32xf32, #tpu.memory_space<vmem>>, %arg3: memref<2x1x32xf32, #tpu.memory_space<vmem>>, %arg4: memref<2x1x8xf32, #tpu.memory_space<vmem>>, %arg5: memref<64x256xbf16, #tpu.memory_space<vmem>>, %arg6: memref<32x256xbf16, #tpu.memory_space<vmem>>, %arg7: memref<3x256xf32, #tpu.memory_space<vmem>>, %arg8: memref<256x128xbf16, #tpu.memory_space<vmem>>, %arg9: memref<3x128xf32, #tpu.memory_space<vmem>>, %arg10: memref<1x128xf32, #tpu.memory_space<vmem>>, %arg11: memref<2x1x32xf32, #tpu.memory_space<vmem>>, %arg12: memref<2x1x8xf32, #tpu.memory_space<vmem>>, %arg13: memref<2x256xf32, #tpu.memory_space<vmem>>, %arg14: memref<2x256xf32, #tpu.memory_space<vmem>>, %arg15: memref<2x128xf32, #tpu.memory_space<vmem>>, %arg16: memref<1x128xf32, #tpu.memory_space<vmem>>) attributes {dimension_semantics = [#tpu.dimension_semantics<arbitrary>, #tpu.dimension_semantics<arbitrary>], iteration_bounds = array<i64: 3, 1>, scalar_prefetch = 0 : i64, scratch_operands = 4 : i64, tpu.core_type = #tpu.core_type<tc>, window_params = [{transform_indices = @transform_0, window_bounds = array<i64: 2, 8, 32>}, {transform_indices = @transform_1, window_bounds = array<i64: 2, 1, 32>}, {transform_indices = @transform_2, window_bounds = array<i64: 2, 1, 8>}, {pipeline_mode = #tpu.pipeline_mode<synchronous>, transform_indices = @transform_3, window_bounds = array<i64: 64, 256>}, {pipeline_mode = #tpu.pipeline_mode<synchronous>, transform_indices = @transform_4, window_bounds = array<i64: 32, 256>}, {pipeline_mode = #tpu.pipeline_mode<synchronous>, transform_indices = @transform_5, window_bounds = array<i64: 3, 256>}, {pipeline_mode = #tpu.pipeline_mode<synchronous>, transform_indices = @transform_6, window_bounds = array<i64: 256, 128>}, {pipeline_mode = #tpu.pipeline_mode<synchronous>, transform_indices = @transform_7, window_bounds = array<i64: 3, 128>}, {pipeline_mode = #tpu.pipeline_mode<synchronous>, transform_indices = @transform_8, window_bounds = array<i64: 1, 128>}, {transform_indices = @transform_9, window_bounds = array<i64: 2, 1, 32>}, {transform_indices = @transform_10, window_bounds = array<i64: 2, 1, 8>}]} {
    %c0 = arith.constant 0 : index
    %c0_0 = arith.constant 0 : index
    %c0_1 = arith.constant 0 : index
    %0 = vector.load %arg2[%c0, %c0_0, %c0_1] : memref<2x8x32xf32, #tpu.memory_space<vmem>>, vector<2x8x32xf32>
    %c0_2 = arith.constant 0 : index
    %c0_3 = arith.constant 0 : index
    %c0_4 = arith.constant 0 : index
    %1 = vector.load %arg3[%c0_2, %c0_3, %c0_4] : memref<2x1x32xf32, #tpu.memory_space<vmem>>, vector<2x1x32xf32>
    %2 = vector.shape_cast %1 : vector<2x1x32xf32> to vector<2x32xf32>
    %3 = vector.shape_cast %2 : vector<2x32xf32> to vector<2x1x32xf32>
    %4 = vector.broadcast %3 : vector<2x1x32xf32> to vector<2x8x32xf32>
    %5 = arith.mulf %0, %4 : vector<2x8x32xf32>
    %6 = tpu.concatenate %0, %5 in 2 : vector<2x8x32xf32>, vector<2x8x32xf32> -> vector<2x8x64xf32>
    %7 = vector.shape_cast %6 : vector<2x8x64xf32> to vector<16x64xf32>
    %8 = arith.truncf %7 : vector<16x64xf32> to vector<16x64xbf16>
    %c0_5 = arith.constant 0 : index
    %c0_6 = arith.constant 0 : index
    %9 = vector.load %arg5[%c0_5, %c0_6] : memref<64x256xbf16, #tpu.memory_space<vmem>>, vector<64x256xbf16>
    %cst = arith.constant dense<0.000000e+00> : vector<16x256xf32>
    %10 = tpu.matmul %8, %9, %cst {dimension_numbers = #tpu.dot_dimension_numbers<[1], [0], [0], [1], [0, 0, 1, 1], [], []>} : vector<16x64xbf16>, vector<64x256xbf16>, vector<16x256xf32> -> vector<16x256xf32>
    %11 = vector.shape_cast %10 : vector<16x256xf32> to vector<2x8x256xf32>
    %12 = arith.truncf %2 : vector<2x32xf32> to vector<2x32xbf16>
    %c0_7 = arith.constant 0 : index
    %c0_8 = arith.constant 0 : index
    %13 = vector.load %arg6[%c0_7, %c0_8] : memref<32x256xbf16, #tpu.memory_space<vmem>>, vector<32x256xbf16>
    %cst_9 = arith.constant dense<0.000000e+00> : vector<2x256xf32>
    %14 = tpu.matmul %12, %13, %cst_9 {dimension_numbers = #tpu.dot_dimension_numbers<[1], [0], [0], [1], [0, 0, 1, 1], [], []>} : vector<2x32xbf16>, vector<32x256xbf16>, vector<2x256xf32> -> vector<2x256xf32>
    %15 = vector.shape_cast %14 : vector<2x256xf32> to vector<2x1x256xf32>
    %16 = vector.broadcast %15 : vector<2x1x256xf32> to vector<2x8x256xf32>
    %17 = arith.addf %11, %16 : vector<2x8x256xf32>
    %c0_10 = arith.constant 0 : index
    %c0_11 = arith.constant 0 : index
    %18 = vector.load %arg7[%c0_10, %c0_11] : memref<3x256xf32, #tpu.memory_space<vmem>>, vector<1x256xf32>
    %19 = vector.shape_cast %18 : vector<1x256xf32> to vector<1x1x256xf32>
    %20 = vector.broadcast %19 : vector<1x1x256xf32> to vector<2x8x256xf32>
    %21 = arith.addf %17, %20 : vector<2x8x256xf32>
    %cst_12 = arith.constant 0.000000e+00 : f32
    %22 = vector.broadcast %cst_12 : f32 to vector<2x8x256xf32>
    %23 = arith.maximumf %21, %22 : vector<2x8x256xf32>
    %24 = vector.shape_cast %23 : vector<2x8x256xf32> to vector<16x256xf32>
    %c0_i32 = arith.constant 0 : i32
    %25 = arith.cmpi eq, %arg0, %c0_i32 : i32
    %26 = arith.extui %25 : i1 to i32
    %c0_i32_13 = arith.constant 0 : i32
    %27 = arith.cmpi ne, %26, %c0_i32_13 : i32
    scf.if %27 {
      %c0_i32_16 = arith.constant 0 : i32
      %34 = arith.cmpi eq, %arg1, %c0_i32_16 : i32
      %35 = arith.extui %34 : i1 to i32
      %c0_i32_17 = arith.constant 0 : i32
      %36 = arith.cmpi ne, %35, %c0_i32_17 : i32
      scf.if %36 {
        %cst_24 = arith.constant 0.000000e+00 : f32
        %46 = vector.broadcast %cst_24 : f32 to vector<2x256xf32>
        %c0_25 = arith.constant 0 : index
        %c0_26 = arith.constant 0 : index
        %47 = vector.load %arg13[%c0_25, %c0_26] : memref<2x256xf32, #tpu.memory_space<vmem>>, vector<2x256xf32>
        tpu.vector_store %arg13[%c0_25, %c0_26], %46 {strides = array<i32>} : memref<2x256xf32, #tpu.memory_space<vmem>>, vector<2x256xf32>,
      } else {
      }
      %cst_18 = arith.constant dense<0.000000e+00> : vector<256xf32>
      %37 = vector.multi_reduction <add>, %24, %cst_18 [0] : vector<16x256xf32> to vector<256xf32>
      %38 = vector.shape_cast %37 : vector<256xf32> to vector<1x256xf32>
      %39 = arith.mulf %24, %24 : vector<16x256xf32>
      %cst_19 = arith.constant dense<0.000000e+00> : vector<256xf32>
      %40 = vector.multi_reduction <add>, %39, %cst_19 [0] : vector<16x256xf32> to vector<256xf32>
      %41 = vector.shape_cast %40 : vector<256xf32> to vector<1x256xf32>
      %c0_20 = arith.constant 0 : index
      %c0_21 = arith.constant 0 : index
      %42 = vector.load %arg13[%c0_20, %c0_21] : memref<2x256xf32, #tpu.memory_space<vmem>>, vector<2x256xf32>
      %43 = tpu.concatenate %38, %41 in 0 : vector<1x256xf32>, vector<1x256xf32> -> vector<2x256xf32>
      %44 = arith.addf %42, %43 : vector<2x256xf32>
      %c0_22 = arith.constant 0 : index
      %c0_23 = arith.constant 0 : index
      %45 = vector.load %arg13[%c0_22, %c0_23] : memref<2x256xf32, #tpu.memory_space<vmem>>, vector<2x256xf32>
      tpu.vector_store %arg13[%c0_22, %c0_23], %44 {strides = array<i32>} : memref<2x256xf32, #tpu.memory_space<vmem>>, vector<2x256xf32>,
    } else {
    }
    %c1_i32 = arith.constant 1 : i32
    %28 = arith.cmpi eq, %arg0, %c1_i32 : i32
    %29 = arith.extui %28 : i1 to i32
    %c0_i32_14 = arith.constant 0 : i32
    %30 = arith.cmpi ne, %29, %c0_i32_14 : i32
    scf.if %30 {
      %c0_i32_16 = arith.constant 0 : i32
      %34 = arith.cmpi eq, %arg1, %c0_i32_16 : i32
      %35 = arith.extui %34 : i1 to i32
      %c0_i32_17 = arith.constant 0 : i32
      %36 = arith.cmpi ne, %35, %c0_i32_17 : i32
      scf.if %36 {
        %c0_33 = arith.constant 0 : index
        %c0_34 = arith.constant 0 : index
        %60 = vector.load %arg13[%c0_33, %c0_34] : memref<2x256xf32, #tpu.memory_space<vmem>>, vector<1x256xf32>
        %cst_35 = arith.constant 6.250000e-02 : f32
        %61 = vector.broadcast %cst_35 : f32 to vector<1x256xf32>
        %62 = arith.mulf %60, %61 : vector<1x256xf32>
        %c1_36 = arith.constant 1 : index
        %c0_37 = arith.constant 0 : index
        %63 = vector.load %arg13[%c1_36, %c0_37] : memref<2x256xf32, #tpu.memory_space<vmem>>, vector<1x256xf32>
        %cst_38 = arith.constant 6.250000e-02 : f32
        %64 = vector.broadcast %cst_38 : f32 to vector<1x256xf32>
        %65 = arith.mulf %63, %64 : vector<1x256xf32>
        %66 = arith.mulf %62, %62 : vector<1x256xf32>
        %67 = arith.subf %65, %66 : vector<1x256xf32>
        %cst_39 = arith.constant 0.000000e+00 : f32
        %68 = vector.broadcast %cst_39 : f32 to vector<1x256xf32>
        %69 = arith.maximumf %67, %68 : vector<1x256xf32>
        %cst_40 = arith.constant 9.99999974E-6 : f32
        %70 = vector.broadcast %cst_40 : f32 to vector<1x256xf32>
        %71 = arith.addf %69, %70 : vector<1x256xf32>
        %72 = math.rsqrt %71 : vector<1x256xf32>
        %c1_41 = arith.constant 1 : index
        %c0_42 = arith.constant 0 : index
        %73 = vector.load %arg7[%c1_41, %c0_42] : memref<3x256xf32, #tpu.memory_space<vmem>>, vector<1x256xf32>
        %74 = arith.mulf %72, %73 : vector<1x256xf32>
        %c2 = arith.constant 2 : index
        %c0_43 = arith.constant 0 : index
        %75 = vector.load %arg7[%c2, %c0_43] : memref<3x256xf32, #tpu.memory_space<vmem>>, vector<1x256xf32>
        %76 = arith.mulf %62, %74 : vector<1x256xf32>
        %77 = arith.subf %75, %76 : vector<1x256xf32>
        %78 = tpu.concatenate %74, %77 in 0 : vector<1x256xf32>, vector<1x256xf32> -> vector<2x256xf32>
        %c0_44 = arith.constant 0 : index
        %c0_45 = arith.constant 0 : index
        %79 = vector.load %arg14[%c0_44, %c0_45] : memref<2x256xf32, #tpu.memory_space<vmem>>, vector<2x256xf32>
        tpu.vector_store %arg14[%c0_44, %c0_45], %78 {strides = array<i32>} : memref<2x256xf32, #tpu.memory_space<vmem>>, vector<2x256xf32>,
        %cst_46 = arith.constant 0.000000e+00 : f32
        %80 = vector.broadcast %cst_46 : f32 to vector<2x128xf32>
        %c0_47 = arith.constant 0 : index
        %c0_48 = arith.constant 0 : index
        %81 = vector.load %arg15[%c0_47, %c0_48] : memref<2x128xf32, #tpu.memory_space<vmem>>, vector<2x128xf32>
        tpu.vector_store %arg15[%c0_47, %c0_48], %80 {strides = array<i32>} : memref<2x128xf32, #tpu.memory_space<vmem>>, vector<2x128xf32>,
      } else {
      }
      %c0_18 = arith.constant 0 : index
      %c0_19 = arith.constant 0 : index
      %37 = vector.load %arg14[%c0_18, %c0_19] : memref<2x256xf32, #tpu.memory_space<vmem>>, vector<1x256xf32>
      %38 = vector.broadcast %37 : vector<1x256xf32> to vector<16x256xf32>
      %39 = arith.mulf %24, %38 : vector<16x256xf32>
      %c1 = arith.constant 1 : index
      %c0_20 = arith.constant 0 : index
      %40 = vector.load %arg14[%c1, %c0_20] : memref<2x256xf32, #tpu.memory_space<vmem>>, vector<1x256xf32>
      %41 = vector.broadcast %40 : vector<1x256xf32> to vector<16x256xf32>
      %42 = arith.addf %39, %41 : vector<16x256xf32>
      %43 = arith.truncf %42 : vector<16x256xf32> to vector<16x256xbf16>
      %c0_21 = arith.constant 0 : index
      %c0_22 = arith.constant 0 : index
      %44 = vector.load %arg8[%c0_21, %c0_22] : memref<256x128xbf16, #tpu.memory_space<vmem>>, vector<256x128xbf16>
      %cst_23 = arith.constant dense<0.000000e+00> : vector<16x128xf32>
      %45 = tpu.matmul %43, %44, %cst_23 {dimension_numbers = #tpu.dot_dimension_numbers<[1], [0], [0], [1], [0, 0, 1, 1], [], []>} : vector<16x256xbf16>, vector<256x128xbf16>, vector<16x128xf32> -> vector<16x128xf32>
      %c0_24 = arith.constant 0 : index
      %c0_25 = arith.constant 0 : index
      %46 = vector.load %arg9[%c0_24, %c0_25] : memref<3x128xf32, #tpu.memory_space<vmem>>, vector<1x128xf32>
      %47 = vector.broadcast %46 : vector<1x128xf32> to vector<16x128xf32>
      %48 = arith.addf %45, %47 : vector<16x128xf32>
      %cst_26 = arith.constant 0.000000e+00 : f32
      %49 = vector.broadcast %cst_26 : f32 to vector<16x128xf32>
      %50 = arith.maximumf %48, %49 : vector<16x128xf32>
      %cst_27 = arith.constant dense<0.000000e+00> : vector<128xf32>
      %51 = vector.multi_reduction <add>, %50, %cst_27 [0] : vector<16x128xf32> to vector<128xf32>
      %52 = vector.shape_cast %51 : vector<128xf32> to vector<1x128xf32>
      %53 = arith.mulf %50, %50 : vector<16x128xf32>
      %cst_28 = arith.constant dense<0.000000e+00> : vector<128xf32>
      %54 = vector.multi_reduction <add>, %53, %cst_28 [0] : vector<16x128xf32> to vector<128xf32>
      %55 = vector.shape_cast %54 : vector<128xf32> to vector<1x128xf32>
      %c0_29 = arith.constant 0 : index
      %c0_30 = arith.constant 0 : index
      %56 = vector.load %arg15[%c0_29, %c0_30] : memref<2x128xf32, #tpu.memory_space<vmem>>, vector<2x128xf32>
      %57 = tpu.concatenate %52, %55 in 0 : vector<1x128xf32>, vector<1x128xf32> -> vector<2x128xf32>
      %58 = arith.addf %56, %57 : vector<2x128xf32>
      %c0_31 = arith.constant 0 : index
      %c0_32 = arith.constant 0 : index
      %59 = vector.load %arg15[%c0_31, %c0_32] : memref<2x128xf32, #tpu.memory_space<vmem>>, vector<2x128xf32>
      tpu.vector_store %arg15[%c0_31, %c0_32], %58 {strides = array<i32>} : memref<2x128xf32, #tpu.memory_space<vmem>>, vector<2x128xf32>,
    } else {
    }
    %c2_i32 = arith.constant 2 : i32
    %31 = arith.cmpi eq, %arg0, %c2_i32 : i32
    %32 = arith.extui %31 : i1 to i32
    %c0_i32_15 = arith.constant 0 : i32
    %33 = arith.cmpi ne, %32, %c0_i32_15 : i32
    scf.if %33 {
      %c0_i32_16 = arith.constant 0 : i32
      %34 = arith.cmpi eq, %arg1, %c0_i32_16 : i32
      %35 = arith.extui %34 : i1 to i32
      %c0_i32_17 = arith.constant 0 : i32
      %36 = arith.cmpi ne, %35, %c0_i32_17 : i32
      scf.if %36 {
        %c0_44 = arith.constant 0 : index
        %c0_45 = arith.constant 0 : index
        %80 = vector.load %arg15[%c0_44, %c0_45] : memref<2x128xf32, #tpu.memory_space<vmem>>, vector<1x128xf32>
        %cst_46 = arith.constant 6.250000e-02 : f32
        %81 = vector.broadcast %cst_46 : f32 to vector<1x128xf32>
        %82 = arith.mulf %80, %81 : vector<1x128xf32>
        %c1_47 = arith.constant 1 : index
        %c0_48 = arith.constant 0 : index
        %83 = vector.load %arg15[%c1_47, %c0_48] : memref<2x128xf32, #tpu.memory_space<vmem>>, vector<1x128xf32>
        %cst_49 = arith.constant 6.250000e-02 : f32
        %84 = vector.broadcast %cst_49 : f32 to vector<1x128xf32>
        %85 = arith.mulf %83, %84 : vector<1x128xf32>
        %86 = arith.mulf %82, %82 : vector<1x128xf32>
        %87 = arith.subf %85, %86 : vector<1x128xf32>
        %cst_50 = arith.constant 0.000000e+00 : f32
        %88 = vector.broadcast %cst_50 : f32 to vector<1x128xf32>
        %89 = arith.maximumf %87, %88 : vector<1x128xf32>
        %cst_51 = arith.constant 9.99999974E-6 : f32
        %90 = vector.broadcast %cst_51 : f32 to vector<1x128xf32>
        %91 = arith.addf %89, %90 : vector<1x128xf32>
        %92 = math.rsqrt %91 : vector<1x128xf32>
        %c1_52 = arith.constant 1 : index
        %c0_53 = arith.constant 0 : index
        %93 = vector.load %arg9[%c1_52, %c0_53] : memref<3x128xf32, #tpu.memory_space<vmem>>, vector<1x128xf32>
        %94 = arith.mulf %92, %93 : vector<1x128xf32>
        %c0_54 = arith.constant 0 : index
        %c0_55 = arith.constant 0 : index
        %95 = vector.load %arg10[%c0_54, %c0_55] : memref<1x128xf32, #tpu.memory_space<vmem>>, vector<1x128xf32>
        %96 = arith.mulf %94, %95 : vector<1x128xf32>
        %c0_56 = arith.constant 0 : index
        %c0_57 = arith.constant 0 : index
        %97 = vector.load %arg16[%c0_56, %c0_57] : memref<1x128xf32, #tpu.memory_space<vmem>>, vector<1x128xf32>
        tpu.vector_store %arg16[%c0_56, %c0_57], %96 {strides = array<i32>} : memref<1x128xf32, #tpu.memory_space<vmem>>, vector<1x128xf32>,
      } else {
      }
      %c0_18 = arith.constant 0 : index
      %c0_19 = arith.constant 0 : index
      %37 = vector.load %arg14[%c0_18, %c0_19] : memref<2x256xf32, #tpu.memory_space<vmem>>, vector<1x256xf32>
      %38 = vector.broadcast %37 : vector<1x256xf32> to vector<16x256xf32>
      %39 = arith.mulf %24, %38 : vector<16x256xf32>
      %c1 = arith.constant 1 : index
      %c0_20 = arith.constant 0 : index
      %40 = vector.load %arg14[%c1, %c0_20] : memref<2x256xf32, #tpu.memory_space<vmem>>, vector<1x256xf32>
      %41 = vector.broadcast %40 : vector<1x256xf32> to vector<16x256xf32>
      %42 = arith.addf %39, %41 : vector<16x256xf32>
      %43 = arith.truncf %42 : vector<16x256xf32> to vector<16x256xbf16>
      %c0_21 = arith.constant 0 : index
      %c0_22 = arith.constant 0 : index
      %44 = vector.load %arg8[%c0_21, %c0_22] : memref<256x128xbf16, #tpu.memory_space<vmem>>, vector<256x128xbf16>
      %cst_23 = arith.constant dense<0.000000e+00> : vector<16x128xf32>
      %45 = tpu.matmul %43, %44, %cst_23 {dimension_numbers = #tpu.dot_dimension_numbers<[1], [0], [0], [1], [0, 0, 1, 1], [], []>} : vector<16x256xbf16>, vector<256x128xbf16>, vector<16x128xf32> -> vector<16x128xf32>
      %c0_24 = arith.constant 0 : index
      %c0_25 = arith.constant 0 : index
      %46 = vector.load %arg9[%c0_24, %c0_25] : memref<3x128xf32, #tpu.memory_space<vmem>>, vector<1x128xf32>
      %47 = vector.broadcast %46 : vector<1x128xf32> to vector<16x128xf32>
      %48 = arith.addf %45, %47 : vector<16x128xf32>
      %cst_26 = arith.constant 0.000000e+00 : f32
      %49 = vector.broadcast %cst_26 : f32 to vector<16x128xf32>
      %50 = arith.maximumf %48, %49 : vector<16x128xf32>
      %51 = vector.shape_cast %50 : vector<16x128xf32> to vector<2x8x128xf32>
      %c0_27 = arith.constant 0 : index
      %c0_28 = arith.constant 0 : index
      %52 = vector.load %arg16[%c0_27, %c0_28] : memref<1x128xf32, #tpu.memory_space<vmem>>, vector<1x128xf32>
      %53 = vector.shape_cast %52 : vector<1x128xf32> to vector<1x1x128xf32>
      %54 = vector.broadcast %53 : vector<1x1x128xf32> to vector<2x8x128xf32>
      %55 = arith.mulf %51, %54 : vector<2x8x128xf32>
      %cst_29 = arith.constant dense<0.000000e+00> : vector<2x8xf32>
      %56 = vector.multi_reduction <add>, %55, %cst_29 [2] : vector<2x8x128xf32> to vector<2x8xf32>
      %c0_30 = arith.constant 0 : index
      %c0_31 = arith.constant 0 : index
      %c0_32 = arith.constant 0 : index
      %57 = vector.load %arg4[%c0_30, %c0_31, %c0_32] : memref<2x1x8xf32, #tpu.memory_space<vmem>>, vector<2x1x8xf32>
      %58 = vector.shape_cast %57 : vector<2x1x8xf32> to vector<2x8xf32>
      %cst_33 = arith.constant 0.000000e+00 : f32
      %59 = vector.broadcast %cst_33 : f32 to vector<2x8xf32>
      %60 = arith.cmpf ogt, %58, %59 : vector<2x8xf32>
      %cst_34 = arith.constant -1.000000e+30 : f32
      %61 = vector.broadcast %cst_34 : f32 to vector<2x8xf32>
      %62 = arith.select %60, %56, %61 : vector<2x8xi1>, vector<2x8xf32>
      %cst_35 = arith.constant dense<0xFF800000> : vector<2xf32>
      %63 = vector.multi_reduction <maximumf>, %62, %cst_35 [1] : vector<2x8xf32> to vector<2xf32>
      %64 = vector.shape_cast %63 : vector<2xf32> to vector<2x1xf32>
      %65 = vector.broadcast %64 : vector<2x1xf32> to vector<2x8xf32>
      %66 = arith.subf %62, %65 : vector<2x8xf32>
      %67 = math.exp %66 : vector<2x8xf32>
      %cst_36 = arith.constant dense<0.000000e+00> : vector<2xf32>
      %68 = vector.multi_reduction <add>, %67, %cst_36 [1] : vector<2x8xf32> to vector<2xf32>
      %69 = vector.shape_cast %68 : vector<2xf32> to vector<2x1xf32>
      %70 = vector.broadcast %69 : vector<2x1xf32> to vector<2x8xf32>
      %71 = arith.divf %67, %70 : vector<2x8xf32>
      %72 = vector.shape_cast %71 : vector<2x8xf32> to vector<2x1x8xf32>
      %c0_37 = arith.constant 0 : index
      %c0_38 = arith.constant 0 : index
      %c0_39 = arith.constant 0 : index
      %73 = vector.load %arg12[%c0_37, %c0_38, %c0_39] : memref<2x1x8xf32, #tpu.memory_space<vmem>>, vector<2x1x8xf32>
      tpu.vector_store %arg12[%c0_37, %c0_38, %c0_39], %72 {strides = array<i32>} : memref<2x1x8xf32, #tpu.memory_space<vmem>>, vector<2x1x8xf32>,
      %74 = vector.shape_cast %71 : vector<2x8xf32> to vector<2x8x1xf32>
      %75 = vector.broadcast %74 : vector<2x8x1xf32> to vector<2x8x32xf32>
      %76 = arith.mulf %75, %0 : vector<2x8x32xf32>
      %cst_40 = arith.constant dense<0.000000e+00> : vector<2x32xf32>
      %77 = vector.multi_reduction <add>, %76, %cst_40 [1] : vector<2x8x32xf32> to vector<2x32xf32>
      %78 = vector.shape_cast %77 : vector<2x32xf32> to vector<2x1x32xf32>
      %c0_41 = arith.constant 0 : index
      %c0_42 = arith.constant 0 : index
      %c0_43 = arith.constant 0 : index
      %79 = vector.load %arg11[%c0_41, %c0_42, %c0_43] : memref<2x1x32xf32, #tpu.memory_space<vmem>>, vector<2x1x32xf32>
      tpu.vector_store %arg11[%c0_41, %c0_42, %c0_43], %78 {strides = array<i32>} : memref<2x1x32xf32, #tpu.memory_space<vmem>>, vector<2x1x32xf32>,
    } else {
    }
    return
  }
  func.func @transform_0(%arg0: i32, %arg1: i32) -> (i32, i32, i32) {
    %c0_i32 = arith.constant 0 : i32
    %c0_i32_0 = arith.constant 0 : i32
    %c0_i32_1 = arith.constant 0 : i32
    return %arg1, %c0_i32, %c0_i32_0 : i32, i32, i32
  }
  func.func @transform_1(%arg0: i32, %arg1: i32) -> (i32, i32, i32) {
    %c0_i32 = arith.constant 0 : i32
    %c0_i32_0 = arith.constant 0 : i32
    %c0_i32_1 = arith.constant 0 : i32
    return %arg1, %c0_i32, %c0_i32_0 : i32, i32, i32
  }
  func.func @transform_2(%arg0: i32, %arg1: i32) -> (i32, i32, i32) {
    %c0_i32 = arith.constant 0 : i32
    %c0_i32_0 = arith.constant 0 : i32
    %c0_i32_1 = arith.constant 0 : i32
    return %arg1, %c0_i32, %c0_i32_0 : i32, i32, i32
  }
  func.func @transform_3(%arg0: i32, %arg1: i32) -> (i32, i32) {
    %c0_i32 = arith.constant 0 : i32
    %c0_i32_0 = arith.constant 0 : i32
    %c0_i32_1 = arith.constant 0 : i32
    return %c0_i32, %c0_i32_0 : i32, i32
  }
  func.func @transform_4(%arg0: i32, %arg1: i32) -> (i32, i32) {
    %c0_i32 = arith.constant 0 : i32
    %c0_i32_0 = arith.constant 0 : i32
    %c0_i32_1 = arith.constant 0 : i32
    return %c0_i32, %c0_i32_0 : i32, i32
  }
  func.func @transform_5(%arg0: i32, %arg1: i32) -> (i32, i32) {
    %c0_i32 = arith.constant 0 : i32
    %c0_i32_0 = arith.constant 0 : i32
    %c0_i32_1 = arith.constant 0 : i32
    return %c0_i32, %c0_i32_0 : i32, i32
  }
  func.func @transform_6(%arg0: i32, %arg1: i32) -> (i32, i32) {
    %c0_i32 = arith.constant 0 : i32
    %c0_i32_0 = arith.constant 0 : i32
    %c0_i32_1 = arith.constant 0 : i32
    return %c0_i32, %c0_i32_0 : i32, i32
  }
  func.func @transform_7(%arg0: i32, %arg1: i32) -> (i32, i32) {
    %c0_i32 = arith.constant 0 : i32
    %c0_i32_0 = arith.constant 0 : i32
    %c0_i32_1 = arith.constant 0 : i32
    return %c0_i32, %c0_i32_0 : i32, i32
  }
  func.func @transform_8(%arg0: i32, %arg1: i32) -> (i32, i32) {
    %c0_i32 = arith.constant 0 : i32
    %c0_i32_0 = arith.constant 0 : i32
    %c0_i32_1 = arith.constant 0 : i32
    return %c0_i32, %c0_i32_0 : i32, i32
  }
  func.func @transform_9(%arg0: i32, %arg1: i32) -> (i32, i32, i32) {
    %c0_i32 = arith.constant 0 : i32
    %c0_i32_0 = arith.constant 0 : i32
    %c0_i32_1 = arith.constant 0 : i32
    return %arg1, %c0_i32, %c0_i32_0 : i32, i32, i32
  }
  func.func @transform_10(%arg0: i32, %arg1: i32) -> (i32, i32, i32) {
    %c0_i32 = arith.constant 0 : i32
    %c0_i32_0 = arith.constant 0 : i32
    %c0_i32_1 = arith.constant 0 : i32
    return %arg1, %c0_i32, %c0_i32_0 : i32, i32, i32
  }
}

</mosaic_0001>

<bundles_post_ra>
// kernel: tpu_custom_call.1
= control target key start
LH: loop header
LB: loop body
LE: loop exit
PB: predicated region body
PF: predicated region fallthrough
CT: control target
= control target key end

     0   :  { %16 = vsyncpa [#allocation7], 0  ;;  %s2744_s0 = inlined_call_operand.hbm [shape: f32[2,8,32], index: 0, kind: input, shape index: {}]   ;;  %s2745_s1 = inlined_call_operand.hbm [shape: f32[2,1,32], index: 1, kind: input, shape index: {}]   ;;  %s2746_s2 = inlined_call_operand.hbm [shape: f32[2,1,8], index: 2, kind: input, shape index: {}]   ;;  %s2747_s3 = inlined_call_operand.hbm [shape: bf16[64,256], index: 3, kind: input, shape index: {}]   ;;  %s2748_s4 = inlined_call_operand.hbm [shape: bf16[32,256], index: 4, kind: input, shape index: {}]   ;;  %s2749_s5 = inlined_call_operand.vmem [shape: f32[3,256], index: 5, kind: input, shape index: {}]   ;;  %s2750_s6 = inlined_call_operand.hbm [shape: bf16[256,128], index: 6, kind: input, shape index: {}]   ;;  %s2751_s7 = inlined_call_operand.vmem [shape: f32[3,128], index: 7, kind: input, shape index: {}]   ;;  %s2752_s8 = inlined_call_operand.vmem [shape: f32[1,128], index: 8, kind: input, shape index: {}]   ;;  %s2753_s9 = inlined_call_operand.hbm [shape: f32[2,1,32], index: 9, kind: output, shape index: {0}]   ;;  %s2754_s10 = inlined_call_operand.hbm [shape: f32[2,1,8], index: 10, kind: output, shape index: {1}]  }
   0x1   :  { %17 = vsyncpa [#allocation10], 0 }
   0x2   :  { %18 = vsyncpa [#allocation13], 0 }
   0x3   :  { %19 = vsyncpa [#allocation16], 0 }
   0x4   :  { %20 = vsyncpa [#allocation8], 0 }
   0x5   :  { %21 = vsyncpa [#allocation19], 0  ;;  %s2441_s13 = smov 0   ;;  %s2443_s14 = smov 0  }
   0x6   :  { %s2445_s15 = smov 0  }
   0x7 LB: > { %s2363_s16 = smov [#allocation9]   ;;  %s2755_s18 = sadd.s32 4294967295, %s2361_s15   ;;  %s2361_s15 = sphi %s2445_s15, %s27_s15   ;;  %s2357_s14 = sphi %s2443_s14, %s2765_s14   ;;  %s2353_s13 = sphi %s2441_s13, %s2764_s13  }
   0x8   : > { %s331_s17 = sshll.u32 %s2363_s16, 4  ;;  %p1809_p0 = scmp.ge.s32.totalorder %s2361_s15, 1  ;;  %s332_s17 = int_to_ptr.vmem [resolvable:$true] %s331_s17 }
   0x9   : > { %p300_p1 = scmp.lt.s32.totalorder %s2361_s15, 4  ;;  %p2461_p2 = scmp.eq.s32.totalorder %s2755_s18, 0 }
   0xa   : > { %s2364_s22 = smov [#allocation12]   ;;  %s2122_s25 = scalar_lea.vmem %s332_s17, 32 }
   0xb   : > { %p2465_p3 = pnand %p1809_p0, %p300_p1  ;;  %s360_s23 = sshll.u32 %s2364_s22, 4  ;;  %s361_s23 = int_to_ptr.vmem [resolvable:$true] %s360_s23 }
   0xc   : > { %p2123_p7 = scmp.ne.s32.totalorder %s332_s17, %s2122_s25  ;;  %p2130_p10 = scmp.lt.s32.totalorder %s332_s17, %s332_s17 }
   0xd   : > { %p1960_p4 = pneg %p2465_p3  ;;  %p2131_p11 = scmp.lt.s32.totalorder %s2122_s25, %s2122_s25 }
   0xf   : > { %p2473_p5 = pnand %p2461_p2, %p1960_p4  ;;  %p2132_p12 = por %p2131_p11, %p2130_p10 }
  0x11   : > { %p2479_p6 = pneg %p2473_p5 }
  0x13   : > { %p2125_p8 = pnand %p2123_p7, %p2479_p6 }
  0x15   : > { %p2126_p9 = pneg %p2125_p8 }
  0x17   : > { %p2133_p13 = pnand %p2132_p12, %p2126_p9 }
  0x19   : > { %2136 = shalt.err (!%p2133_p13)
}
  0x1a   : > { %s2365_s26 = smov 16   ;;  %s2366_s27 = smov 1  }
  0x1b   : > { %1966 = dma.hbm_to_vmem [thread:$0]  (!%p2473_p5), %s2745_s1, 32, %s332_s17, [#allocation10], %s2365_s26, %s2365_s26, %s2366_s27  }
  0x1c   : > { %s2148_s30 = scalar_lea.vmem %s361_s23, 1024  ;;  %p2156_p7 = scmp.lt.s32.totalorder %s361_s23, %s361_s23 }
  0x1d   : > { %p2149_p0 = scmp.ne.s32.totalorder %s361_s23, %s2148_s30  ;;  %p2157_p8 = scmp.lt.s32.totalorder %s2148_s30, %s2148_s30 }
  0x1f   : > { %p2151_p1 = pnand %p2149_p0, %p2479_p6  ;;  %p2158_p9 = por %p2157_p8, %p2156_p7 }
  0x21   : > { %p2152_p4 = pneg %p2151_p1 }
  0x23   : > { %p2159_p10 = pnand %p2158_p9, %p2152_p4 }
  0x25   : > { %2162 = shalt.err (!%p2159_p10)
}
  0x26   : > { %s2756_s11 = smov 128   ;;  %s2368_s12 = smov 8  }
  0x27   : > { %1972 = dma.hbm_to_vmem [thread:$0]  (!%p2473_p5), %s2747_s3, 1024, %s361_s23, [#allocation13], %s2756_s11, %s2756_s11, %s2368_s12  }
  0x28   : > { %s39_s22 = sadd.s32 1, %s2357_s14  ;;  %s2369_s25 = smov [#allocation6]  }
  0x29   : > { %p41_p11 = scmp.ge.s32.totalorder %s39_s22, 3  ;;  %s315_s28 = sshll.u32 %s2369_s25, 4  ;;  %s316_s28 = int_to_ptr.vmem [resolvable:$true] %s315_s28 }
  0x2a   : > { %s2370_s29 = smov [#allocation11]   ;;  %s2174_s18 = scalar_lea.vmem %s316_s28, 256 }
  0x2b   : > { %s2767_s22 = smov (%p41_p11, %s39_s22), 0  ;;  %s347_s30 = sshll.u32 %s2370_s29, 4  ;;  %s348_s30 = int_to_ptr.vmem [resolvable:$true] %s347_s30 }
  0x2c   : > { %p2175_p12 = scmp.ne.s32.totalorder %s316_s28, %s2174_s18  ;;  %p2182_p1 = scmp.lt.s32.totalorder %s316_s28, %s316_s28 }
  0x2d   : > { %p2183_p4 = scmp.lt.s32.totalorder %s2174_s18, %s2174_s18 }
  0x2e   : > { %p2177_p13 = pnand %p2175_p12, %p2479_p6 }
  0x2f   : > { %p2184_p7 = por %p2183_p4, %p2182_p1 }
  0x30   : > { %p2178_p0 = pneg %p2177_p13 }
  0x32   : > { %p2185_p8 = pnand %p2184_p7, %p2178_p0 }
  0x34   : > { %2188 = shalt.err (!%p2185_p8)
}
  0x35   : > { %1963 = dma.hbm_to_vmem [thread:$0]  (!%p2473_p5), %s2744_s0, 256, %s316_s28, [#allocation7], %s2756_s11, %s2756_s11, %s2368_s12  }
  0x36   : > { %s2200_s17 = scalar_lea.vmem %s348_s30, 32  ;;  %p2208_p12 = scmp.lt.s32.totalorder %s348_s30, %s348_s30 }
  0x37   : > { %p2201_p9 = scmp.ne.s32.totalorder %s348_s30, %s2200_s17  ;;  %p2209_p13 = scmp.lt.s32.totalorder %s2200_s17, %s2200_s17 }
  0x39   : > { %p2203_p10 = pnand %p2201_p9, %p2479_p6  ;;  %p2210_p0 = por %p2209_p13, %p2208_p12 }
  0x3b   : > { %p2204_p11 = pneg %p2203_p10 }
  0x3d   : > { %p2211_p1 = pnand %p2210_p0, %p2204_p11 }
  0x3f   : > { %2214 = shalt.err (!%p2211_p1)
}
  0x40   : > { %1969 = dma.hbm_to_vmem [thread:$0]  (!%p2473_p5), %s2746_s2, 32, %s348_s30, [#allocation10], %s2365_s26, %s2365_s26, %s2366_s27  }
  0x41   : > { %s2371_s28 = smov [#allocation14]   ;;  %s2372_s23 = smov [#allocation15]  }
  0x42   : > { %s373_s29 = sshll.u32 %s2371_s28, 4  ;;  %s389_s16 = sshll.u32 %s2372_s23, 4  ;;  %s374_s29 = int_to_ptr.vmem [resolvable:$true] %s373_s29  ;;  %s390_s16 = int_to_ptr.vmem [resolvable:$true] %s389_s16 }
  0x43   : > { %s2226_s11 = scalar_lea.vmem %s374_s29, 512  ;;  %p2234_p9 = scmp.lt.s32.totalorder %s374_s29, %s374_s29 }
  0x44   : > { %p2227_p4 = scmp.ne.s32.totalorder %s374_s29, %s2226_s11  ;;  %p2235_p10 = scmp.lt.s32.totalorder %s2226_s11, %s2226_s11 }
  0x46   : > { %p2229_p7 = pnand %p2227_p4, %p2479_p6  ;;  %p2236_p11 = por %p2235_p10, %p2234_p9 }
  0x48   : > { %p2230_p8 = pneg %p2229_p7 }
  0x4a   : > { %p2237_p12 = pnand %p2236_p11, %p2230_p8 }
  0x4c   : > { %2240 = shalt.err (!%p2237_p12)
}
  0x4d   : > { %s2761_s17 = smov 128   ;;  %s2252_s30 = scalar_lea.vmem %s390_s16, 2048 }
  0x4e   : > { %1975 = dma.hbm_to_vmem [thread:$0]  (!%p2473_p5), %s2748_s4, 512, %s374_s29, [#allocation13], %s2761_s17, %s2761_s17, %s2368_s12  }
  0x4f   : > { %p2253_p13 = scmp.ne.s32.totalorder %s390_s16, %s2252_s30  ;;  %p2260_p4 = scmp.lt.s32.totalorder %s390_s16, %s390_s16 }
  0x50   : > { %p2261_p7 = scmp.lt.s32.totalorder %s2252_s30, %s2252_s30 }
  0x51   : > { %p2255_p0 = pnand %p2253_p13, %p2479_p6 }
  0x52   : > { %p2262_p8 = por %p2261_p7, %p2260_p4 }
  0x53   : > { %p2256_p1 = pneg %p2255_p0 }
  0x55   : > { %p2263_p9 = pnand %p2262_p8, %p2256_p1 }
  0x57   : > { %2266 = shalt.err (!%p2263_p9)
}
  0x58   : > { %s2373_s11 = smov 64   ;;  %s2374_s18 = smov 4  }
  0x59   : > { %1978 = dma.hbm_to_vmem [thread:$0]  (!%p2473_p5), %s2750_s6, 2048, %s390_s16, [#allocation16], %s2373_s11, %s2373_s11, %s2374_s18  }
  0x5a   : > { %411 = sbr.rel (%p2465_p3) target bundleno = 1780 (0x6f4), region = 56 }
  0x5f   : > { %2328 = dma.done.wait (%p2461_p2), [#allocation7], 256  }
  0x60   : > { %2330 = vsyncadd (%p2461_p2), [#allocation7], 4294967040 }
  0x61   : > { %2332 = dma.done.wait (%p2461_p2), [#allocation10], 64  }
  0x62   : > { %2334 = vsyncadd (%p2461_p2), [#allocation10], 4294967232 }
  0x63   : > { %2336 = dma.done.wait (%p2461_p2), [#allocation13], 1536  }
  0x64   : > { %2338 = vsyncadd (%p2461_p2), [#allocation13], 4294965760 }
  0x65   : > { %2340 = dma.done.wait (%p2461_p2), [#allocation16], 2048  }
  0x66   : > { %2342 = vsyncadd (%p2461_p2), [#allocation16], 4294965248  ;;  %v471_v0 = vlaneseq  ;;  %v2375_v1 = vmov 0   ;;  %v2567_v4 = vld [vmem:[#allocation6] sm:$0xff]  ;;  %v2569_v5 = vld [vmem:[#allocation6 + $0x8] sm:$0xff]  ;;  %vm601_vm0 = vcmask 1041409  }
  0x67   : > { %659 = vmatprep.mubr.bf16.mxu1 %v2375_v1  ;;  %579 = vmatprep.mubr.bf16.mxu0 %v2375_v1  ;;  %v467_v6 = vld [vmem:[#allocation9] sm:$0x1]  ;;  %v468_v7 = vld [vmem:[#allocation9 + $0x1] sm:$0x1]  ;;  %v2049_v13 = vld [vmem:[#allocation14 + $0x10] ss:$8 sps:$4 sm:$0xff]  }
  0x68   : > { %v2562_v2 = vshrl.u32 %v471_v0, 7  ;;  %v590_v9 = vpack.c.bf16 %v467_v6, %v467_v6  ;;  %v591_v11 = vpack.c.bf16 %v468_v7, %v468_v7  ;;  %v2047_v12 = vld [vmem:[#allocation14 + $0x14] ss:$8 sps:$4 sm:$0xff]   ;;  %v2052_v19 = vld [vmem:[#allocation14 + $0x4] ss:$8 sps:$4 sm:$0xff]   ;;  %s2376_s19 = smov 32  }
  0x69   : > { %v2050_v15 = vld [vmem:[#allocation12 + $0x34] ss:$8 sps:$4 sm:$0xff]   ;;  %639 = vmatprep.subr.bf16.mxu1 %v2047_v12  ;;  %v2054_v20 = vld [vmem:[#allocation12 + $0x30] ss:$8 sps:$4 sm:$0xff]   ;;  %v2055_v21 = vld [vmem:[#allocation14] ss:$8 sps:$4 sm:$0xff]  }
  0x6a   : > { %v2565_v3 = vsub.s32 0, %v2562_v2  ;;  %v598_v17 = vunpack.c.l.b16 %v590_v9  ;;  %v599_v18 = vunpack.c.l.b16 %v591_v11  ;;  %640 = vmatpush1.bf16.msra.mxu1 %v2049_v13  ;;  %555 = vmatprep.subr.bf16.mxu0 %v2050_v15  ;;  %v2056_v24 = vld [vmem:[#allocation12 + $0x24] ss:$8 sps:$4 sm:$0xff]   ;;  %v2058_v25 = vld [vmem:[#allocation12 + $0x20] ss:$8 sps:$4 sm:$0xff]   ;;  %vm491_vm1 = vcmask 261120  }
  0x6b   : > { %641 = vmatprep.subr.bf16.mxu1 %v2052_v19  ;;  %556 = vmatpush1.bf16.msra.mxu0 %v2054_v20  ;;  %v2059_v26 = vld [vmem:[#allocation12 + $0x14] ss:$8 sps:$4 sm:$0xff]   ;;  %v2061_v29 = vld [vmem:[#allocation12 + $0x10] ss:$8 sps:$4 sm:$0xff]   ;;  %v2062_v30 = vld [vmem:[#allocation12 + $0x4] ss:$8 sps:$4 sm:$0xff]  }
  0x6c   : > { %v474_v8 = vrot.slane %v467_v6, %v2565_v3  ;;  %v478_v10 = vrot.slane %v468_v7, %v2565_v3  ;;  %v600_v22 = vrot.slane %v599_v18, 7  ;;  %557 = vmatprep.subr.bf16.mxu0 %v2056_v24  ;;  %v2064_v31 = vld [vmem:[#allocation12] ss:$8 sps:$4 sm:$0xff]   ;;  %vm543_vm2 = vcmask 523264   ;;  %p1837_p2 = scmp.ne.s32.totalorder %s2353_s13, 0 }
  0x6d   : > { %v2377_v43 = vmov 1966171168   ;;  %v2586_v50 = vsub.s32 1, %v2562_v2  ;;  %v717_v51 = vld [vmem:[%s2749_s5] ss:$4 sm:$0x3] }
  0x6e   : > { %v481_v14 = vmul.f32 %v474_v8, %v2567_v4  ;;  %v482_v16 = vmul.f32 %v478_v10, %v2569_v5  ;;  %v602_v27 = vsel %vm601_vm0, %v600_v22, %v598_v17  ;;  %642 = vmatpush1.bf16.msra.mxu1 %v2055_v21  ;;  %v672_v44 = vunpack.c.l.s4 %v2377_v43 }
  0x6f   : > { %v603_v28 = vpack.c.b16 %v602_v27, %v602_v27  ;;  %558 = vmatpush1.bf16.msra.mxu0 %v2058_v25  ;;  %v722_v54 = vrot.slane %v717_v51, %v2565_v3  ;;  %v726_v58 = vrot.slane %v717_v51, %v2586_v50 }
  0x70   : > { %v2042_v23 = vpack.i.bf16 %v482_v16, %v481_v14  ;;  %559 = vmatprep.subr.bf16.mxu0 %v2059_v26  ;;  %v673_v45 = vunpack.c.0.s8 %v672_v44 }
  0x71   : > { %1836 = vmatmul.mubr.msk.bf16.vlgmr.msra.gmra.mxu1 %vm491_vm1, %v603_v28 }
  0x72   : > { %2043 = vrot.lane.b32.xlu0 %v2042_v23, %s2376_s19  ;;  %v2581_v46 = vsub.s32 %v673_v45, %v2562_v2 }
  0x73   : > { %560 = vmatpush1.bf16.msra.mxu0 %v2061_v29 }
  0x74   : > { %561 = vmatprep.subr.bf16.mxu0 %v2062_v30 }
  0x77   : > { %562 = vmatpush1.bf16.msra.mxu0 %v2064_v31 }
  0xe4   : > { %v2044_v32 = vpop.permute.xlu0 %2043 }
  0xe5   : > { %v2046_v33 = vunpack.i.h.bf16 %v2044_v32  ;;  %v2045_v34 = vunpack.i.l.bf16 %v2044_v32 }
  0xe7   : > { %v493_v35 = vsel %vm491_vm1, %v2569_v5, %v2046_v33  ;;  %v492_v36 = vsel %vm491_vm1, %v2567_v4, %v2045_v34 }
  0xe8   : > { %v494_v37 = vpack.c.bf16 %v493_v35, %v492_v36 }
  0xea   : > { %1831 = vmatmul.mubr.msk.bf16.vlgmr.msra.gmra.mxu0 %vm543_vm2, %v494_v37 }
 0x131   : > { %v661_v38 = vpop.f32.mrf.mxu1 }
 0x133   : > { %v663_v39 = vpop.f32.mrf.mxu1 }
 0x134   : > { %v670_v40 = vcombine.low %v661_v38, %v663_v39 }
 0x135   : > { %v665_v41 = vpop.f32.mrf.mxu1 }
 0x136   : > { %v677_v47 = vrot.slane %v670_v40, %v2581_v46 }
 0x137   : > { %v666_v42 = vpop.f32.mrf.mxu1 }
 0x138   : > { %v678_v48 = vcombine.high %v677_v47, %v677_v47  ;;  %v685_v49 = vrot.slane %v677_v47, %v2581_v46 }
 0x13a   : > { %v696_v52 = vrot.slane %v685_v49, %v2565_v3  ;;  %v692_v53 = vrot.slane %v678_v48, %v2581_v46  ;;  %v700_v55 = vrot.slane %v685_v49, %v2586_v50 }
 0x13c   : > { %v704_v59 = vrot.slane %v692_v53, %v2565_v3  ;;  %v708_v8 = vrot.slane %v692_v53, %v2586_v50 }
 0x1aa   : > { %v581_v56 = vpop.f32.mrf.mxu0 }
 0x1ab   : > { %v713_v57 = vadd.f32 %v696_v52, %v581_v56 }
 0x1ac   : > { %v583_v60 = vpop.f32.mrf.mxu0 }
 0x1ad   : > { %v729_v61 = vadd.f32 %v722_v54, %v713_v57  ;;  %v714_v62 = vadd.f32 %v700_v55, %v583_v60 }
 0x1ae   : > { %v585_v63 = vpop.f32.mrf.mxu0 }
 0x1af   : > { %v2597_v1 = vmax.f32 %v729_v61, 0.0  ;;  %v730_v6 = vadd.f32 %v726_v58, %v714_v62  ;;  %v715_v7 = vadd.f32 %v704_v59, %v585_v63 }
 0x1b0   : > { %v587_v9 = vpop.f32.mrf.mxu0 }
 0x1b1   : > { %v2600_v10 = vmax.f32 %v730_v6, 0.0  ;;  %v731_v11 = vadd.f32 %v722_v54, %v715_v7  ;;  %v716_v12 = vadd.f32 %v708_v8, %v587_v9  ;;  %740 = sbr.rel (%p1837_p2) target bundleno = 463 (0x1cf), region = 84 }
 0x1b3   : > { %v2602_v13 = vmax.f32 %v731_v11, 0.0  ;;  %v732_v14 = vadd.f32 %v726_v58, %v716_v12 }
 0x1b5   : > { %v2604_v15 = vmax.f32 %v732_v14, 0.0 }
 0x1b6   : > { %v746_v16 = vadd.f32 %v2602_v13, %v2597_v1  ;;  %v760_v18 = vmul.f32 %v2597_v1, %v2597_v1  ;;  %v2378_v19 = vmov 0.0   ;;  %v761_v20 = vmul.f32 %v2600_v10, %v2600_v10 }
 0x1b7   : > { %v753_v17 = vadd.f32 %v2604_v15, %v2600_v10  ;;  %745 = vst [vmem:[#allocation2] sm:$0xf] %v2378_v19  ;;  %v762_v21 = vmul.f32 %v2602_v13, %v2602_v13  ;;  %v763_v22 = vmul.f32 %v2604_v15, %v2604_v15  ;;  %v2379_v37 = vmov 1983009808  }
 0x1b8   : > { %v747_v23 = vrot.slane %v746_v16, 4  ;;  %v786_v38 = vunpack.c.l.s4 %v2379_v37  ;;  %vm779_vm3 = vcmask 1040384  }
 0x1b9   : > { %v754_v24 = vrot.slane %v753_v17, 4  ;;  %v764_v25 = vadd.f32 %v762_v21, %v760_v18  ;;  %v771_v26 = vadd.f32 %v763_v22, %v761_v20 }
 0x1ba   : > { %v748_v27 = vadd.f32 %v747_v23, %v746_v16  ;;  %v787_v45 = vunpack.c.0.s8 %v786_v38 }
 0x1bb   : > { %v755_v28 = vadd.f32 %v754_v24, %v753_v17  ;;  %v765_v29 = vrot.slane %v764_v25, 4  ;;  %v772_v30 = vrot.slane %v771_v26, 4 }
 0x1bc   : > { %v749_v31 = vrot.slane %v748_v27, 2  ;;  %v790_v54 = vsub.s32 %v787_v45, %v2562_v2 }
 0x1bd   : > { %v756_v32 = vrot.slane %v755_v28, 2  ;;  %v766_v33 = vadd.f32 %v765_v29, %v764_v25  ;;  %v773_v34 = vadd.f32 %v772_v30, %v771_v26 }
 0x1be   : > { %v750_v35 = vadd.f32 %v749_v31, %v748_v27  ;;  %v778_v58 = vld [vmem:[#allocation2] sm:$0xf] }
 0x1bf   : > { %v757_v36 = vadd.f32 %v756_v32, %v755_v28  ;;  %v767_v39 = vrot.slane %v766_v33, 2  ;;  %v774_v40 = vrot.slane %v773_v34, 2 }
 0x1c0   : > { %v751_v41 = vrot.slane %v750_v35, 1 }
 0x1c1   : > { %v758_v42 = vrot.slane %v757_v36, 1  ;;  %v768_v43 = vadd.f32 %v767_v39, %v766_v33  ;;  %v775_v44 = vadd.f32 %v774_v40, %v773_v34 }
 0x1c2   : > { %v752_v47 = vadd.f32 %v751_v41, %v750_v35 }
 0x1c3   : > { %v759_v48 = vadd.f32 %v758_v42, %v757_v36  ;;  %v769_v49 = vrot.slane %v768_v43, 1  ;;  %v776_v51 = vrot.slane %v775_v44, 1 }
 0x1c5   : > { %v770_v52 = vadd.f32 %v769_v49, %v768_v43  ;;  %v777_v53 = vadd.f32 %v776_v51, %v775_v44 }
 0x1c7   : > { %v780_v55 = vsel %vm779_vm3, %v752_v47, %v770_v52  ;;  %v781_v56 = vsel %vm779_vm3, %v759_v48, %v777_v53 }
 0x1c8   : > { %v784_v57 = vcombine.low %v780_v55, %v781_v56 }
 0x1ca   : > { %v791_v59 = vrot.slane %v784_v57, %v790_v54 }
 0x1cc   : > { %v793_v60 = vadd.f32 %v791_v59, %v778_v58 }
 0x1ce   : > { %794 = vst [vmem:[#allocation2] sm:$0xf] %v793_v60 }
 0x1cf PF: > { %p1838_p3 = scmp.ne.s32.totalorder %s2353_s13, 1 }
 0x1d1   : > { %798 = sbr.rel (%p1838_p3) target bundleno = 752 (0x2f0), region = 92 }
 0x1d6   : > { %v2065_v61 = vld [vmem:[#allocation15 + $0x78] sm:$0xff]   ;;  %v2067_v63 = vld [vmem:[#allocation15 + $0x70] sm:$0xff]   ;;  %v2069_v7 = vld [vmem:[#allocation15 + $0x68] sm:$0xff]   ;;  %vm842_vm4 = vcmask 1040384  }
 0x1d7   : > { %v2066_v62 = vld [vmem:[#allocation15 + $0x38] sm:$0xff]   ;;  %1884 = vmatprep.subr.bf16.mxu0 %v2065_v61  ;;  %v2068_v6 = vld [vmem:[#allocation15 + $0x30] sm:$0xff]   ;;  %v2070_v8 = vld [vmem:[#allocation15 + $0x28] sm:$0xff]   ;;  %v2380_v61 = vmov 0.0  }
 0x1d8   : > { %1885 = vmatpush3.bf16.msra.mxu0 %v2066_v62  ;;  %v2071_v9 = vld [vmem:[#allocation15 + $0x60] sm:$0xff]   ;;  %v2073_v12 = vld [vmem:[#allocation15 + $0x58] sm:$0xff]   ;;  %v2075_v16 = vld [vmem:[#allocation15 + $0x50] sm:$0xff]   ;;  %857 = vst [vmem:[#allocation4] sm:$0x3] %v2380_v61 }
 0x1d9   : > { %1886 = vmatprep.subr.bf16.mxu0 %v2067_v63  ;;  %v2072_v11 = vld [vmem:[#allocation15 + $0x20] sm:$0xff]   ;;  %v2074_v14 = vld [vmem:[#allocation15 + $0x18] sm:$0xff]   ;;  %v2076_v21 = vld [vmem:[#allocation15 + $0x10] sm:$0xff]  }
 0x1da   : > { %v803_v17 = vld [vmem:[#allocation2] ss:$2 sm:$0x3]  ;;  %v806_v18 = vld [vmem:[#allocation2 + $0x1] ss:$2 sm:$0x3] }
 0x1db   : > { %v804_v19 = vmul.f32 0.0625, %v803_v17  ;;  %v807_v20 = vmul.f32 0.0625, %v806_v18  ;;  %v2077_v23 = vld [vmem:[#allocation15 + $0x48] sm:$0xff]   ;;  %v2079_v27 = vld [vmem:[#allocation15 + $0x40] sm:$0xff]  }
 0x1dc   : > { %1887 = vmatpush3.bf16.msra.mxu0 %v2068_v6  ;;  %v2078_v25 = vld [vmem:[#allocation15 + $0x8] sm:$0xff]   ;;  %v2080_v29 = vld [vmem:[#allocation15] sm:$0xff]  }
 0x1dd   : > { %1888 = vmatprep.subr.bf16.mxu0 %v2069_v7  ;;  %v808_v22 = vmul.f32 %v804_v19, %v804_v19  ;;  %v1839_v30 = vld [vmem:[%s2749_s5 + $0x1] ss:$4 sm:$0x3]  ;;  %v1840_v33 = vld [vmem:[%s2749_s5 + $0x2] ss:$4 sm:$0x3] }
 0x1de   : > { %v1842_v63 = vld [vmem:[%s2751_s7] ss:$0 sm:$0xff] }
 0x1df   : > { %v809_v24 = vsub.f32 %v807_v20, %v808_v22 }
 0x1e0   : > { %1889 = vmatpush3.bf16.msra.mxu0 %v2070_v8 }
 0x1e1   : > { %1890 = vmatprep.subr.bf16.mxu0 %v2071_v9  ;;  %v810_v26 = vmax.f32 %v809_v24, 0.0 }
 0x1e3   : > { %v811_v28 = vadd.f32 1e-05, %v810_v26 }
 0x1e4   : > { %1891 = vmatpush3.bf16.msra.mxu0 %v2072_v11 }
 0x1e5   : > { %1892 = vmatprep.subr.bf16.mxu0 %v2073_v12  ;;  %2081 = vrsqrt.f32 %v811_v28 }
 0x1e8   : > { %1893 = vmatpush3.bf16.msra.mxu0 %v2074_v14 }
 0x1e9   : > { %1894 = vmatprep.subr.bf16.mxu0 %v2075_v16 }
 0x1ec   : > { %1895 = vmatpush3.bf16.msra.mxu0 %v2076_v21 }
 0x1ed   : > { %1896 = vmatprep.subr.bf16.mxu0 %v2077_v23 }
 0x1f0   : > { %1897 = vmatpush3.bf16.msra.mxu0 %v2078_v25 }
 0x1f1   : > { %1898 = vmatprep.subr.bf16.mxu0 %v2079_v27 }
 0x1f2   : > { %v2082_v31 = vpop.eup %2081 }
 0x1f3   : > { %v815_v32 = vmul.f32 %v2082_v31, %v1839_v30 }
 0x1f4   : > { %1899 = vmatpush3.bf16.msra.mxu0 %v2080_v29 }
 0x1f5   : > { %v818_v34 = vmul.f32 %v815_v32, %v804_v19  ;;  %v824_v36 = vrot.slane %v815_v32, %v2565_v3  ;;  %v828_v37 = vrot.slane %v815_v32, %v2586_v50 }
 0x1f7   : > { %v819_v35 = vsub.f32 %v1840_v33, %v818_v34  ;;  %v1085_v34 = vld [vmem:[#allocation4] sm:$0x3] }
 0x1f9   : > { %v835_v38 = vrot.slane %v819_v35, %v2565_v3  ;;  %v839_v39 = vrot.slane %v819_v35, %v2586_v50 }
 0x1fb   : > { %v843_v40 = vsel %vm842_vm4, %v824_v36, %v835_v38  ;;  %v844_v41 = vsel %vm842_vm4, %v828_v37, %v839_v39 }
 0x1fc   : > { %v847_v42 = vcombine.low %v843_v40, %v844_v41 }
 0x1fe   : > { %1841 = vst.sshfl [vmem:[#allocation3] sm:$0x33 pattern:$0x76325410] %v847_v42 }
 0x205   : > { %v858_v43 = vld [vmem:[#allocation3] ss:$2 sm:$0x3]  ;;  %v875_v44 = vld [vmem:[#allocation3 + $0x1] ss:$2 sm:$0x3] }
 0x206   : > { %v863_v45 = vrot.slane %v858_v43, %v2565_v3  ;;  %v867_v47 = vrot.slane %v858_v43, %v2586_v50  ;;  %v880_v48 = vrot.slane %v875_v44, %v2565_v3  ;;  %v884_v49 = vrot.slane %v875_v44, %v2586_v50 }
 0x208   : > { %v871_v51 = vmul.f32 %v867_v47, %v2600_v10  ;;  %v873_v52 = vmul.f32 %v867_v47, %v2604_v15  ;;  %v870_v53 = vmul.f32 %v863_v45, %v2597_v1  ;;  %v872_v54 = vmul.f32 %v863_v45, %v2602_v13 }
 0x20a   : > { %v888_v55 = vadd.f32 %v884_v49, %v871_v51  ;;  %v890_v56 = vadd.f32 %v884_v49, %v873_v52  ;;  %v887_v57 = vadd.f32 %v880_v48, %v870_v53  ;;  %v889_v58 = vadd.f32 %v880_v48, %v872_v54 }
 0x20c   : > { %v892_v59 = vpack.c.bf16 %v890_v56, %v888_v55  ;;  %v891_v60 = vpack.c.bf16 %v889_v58, %v887_v57 }
 0x20e   : > { %1058 = vmatprep.mubr.bf16.mxu0 %v892_v59 }
 0x20f   : > { %1059 = vmatmul.mubr.bf16.vlgmr.msra.gmra.mxu0 %v891_v60 }
 0x2cf   : > { %v1900_v62 = vpop.f32.mrf.mxu0 }
 0x2d1   : > { %v1901_v6 = vpop.f32.mrf.mxu0 }
 0x2d2   : > { %v1902_v7 = vadd.f32 %v1901_v6, %v1900_v62 }
 0x2d3   : > { %v1903_v8 = vpop.f32.mrf.mxu0 }
 0x2d4   : > { %v1061_v9 = vadd.f32 %v1902_v7, %v1842_v63 }
 0x2d5   : > { %v1904_v11 = vpop.f32.mrf.mxu0 }
 0x2d6   : > { %v1905_v12 = vadd.f32 %v1904_v11, %v1903_v8  ;;  %v1067_v14 = vmax.f32 %v1061_v9, 0.0 }
 0x2d8   : > { %v1064_v16 = vadd.f32 %v1905_v12, %v1842_v63  ;;  %v1076_v18 = vmul.f32 %v1067_v14, %v1067_v14 }
 0x2da   : > { %v1068_v17 = vmax.f32 %v1064_v16, 0.0 }
 0x2dc   : > { %v1069_v19 = vadd.f32 %v1068_v17, %v1067_v14  ;;  %v1077_v20 = vmul.f32 %v1068_v17, %v1068_v17 }
 0x2de   : > { %v1070_v21 = vrot.slane %v1069_v19, 4  ;;  %v1078_v22 = vadd.f32 %v1077_v20, %v1076_v18 }
 0x2e0   : > { %v1071_v23 = vadd.f32 %v1070_v21, %v1069_v19  ;;  %v1079_v24 = vrot.slane %v1078_v22, 4 }
 0x2e2   : > { %v1072_v25 = vrot.slane %v1071_v23, 2  ;;  %v1080_v26 = vadd.f32 %v1079_v24, %v1078_v22 }
 0x2e4   : > { %v1073_v27 = vadd.f32 %v1072_v25, %v1071_v23  ;;  %v1081_v28 = vrot.slane %v1080_v26, 2 }
 0x2e6   : > { %v1074_v29 = vrot.slane %v1073_v27, 1  ;;  %v1082_v30 = vadd.f32 %v1081_v28, %v1080_v26 }
 0x2e8   : > { %v1083_v31 = vrot.slane %v1082_v30, 1  ;;  %v1075_v32 = vadd.f32 %v1074_v29, %v1073_v27 }
 0x2ea   : > { %v1084_v33 = vadd.f32 %v1083_v31, %v1082_v30 }
 0x2ec   : > { %v1087_v35 = vsel %vm842_vm4, %v1075_v32, %v1084_v33 }
 0x2ed   : > { %v1088_v36 = vadd.f32 %v1087_v35, %v1085_v34 }
 0x2ef   : > { %1089 = vst [vmem:[#allocation4] sm:$0x3] %v1088_v36 }
 0x2f0 PF: > { %p1859_p5 = scmp.ne.s32.totalorder %s2353_s13, 2 }
 0x2f2   : > { %1093 = sbr.rel (%p1859_p5) target bundleno = 1749 (0x6d5), region = 100 }
 0x2f7   : > { %v2085_v37 = vld [vmem:[#allocation15 + $0x78] sm:$0xff]   ;;  %v2087_v39 = vld [vmem:[#allocation15 + $0x70] sm:$0xff]   ;;  %v2089_v41 = vld [vmem:[#allocation15 + $0x68] sm:$0xff]   ;;  %vm1570_vm7 = vcmask 58368   ;;  %vm1627_vm8 = vcmask 57344   ;;  %vm1660_vm9 = vcmask 253952  }
 0x2f8   : > { %v2086_v38 = vld [vmem:[#allocation15 + $0x38] sm:$0xff]   ;;  %1906 = vmatprep.subr.bf16.mxu0 %v2085_v37  ;;  %v2088_v40 = vld [vmem:[#allocation15 + $0x30] sm:$0xff]   ;;  %v2090_v42 = vld [vmem:[#allocation15 + $0x28] sm:$0xff]  }
 0x2f9   : > { %1907 = vmatpush3.bf16.msra.mxu0 %v2086_v38  ;;  %v2091_v43 = vld [vmem:[#allocation15 + $0x60] sm:$0xff]   ;;  %v2093_v45 = vld [vmem:[#allocation15 + $0x58] sm:$0xff]   ;;  %v2095_v48 = vld [vmem:[#allocation15 + $0x50] sm:$0xff]  }
 0x2fa   : > { %1908 = vmatprep.subr.bf16.mxu0 %v2087_v39  ;;  %v2092_v44 = vld [vmem:[#allocation15 + $0x20] sm:$0xff]   ;;  %v2094_v47 = vld [vmem:[#allocation15 + $0x18] sm:$0xff]   ;;  %v2096_v55 = vld [vmem:[#allocation15 + $0x10] sm:$0xff]   ;;  %v2381_v39 = vmov 0  }
 0x2fb   : > { %v1112_v49 = vld [vmem:[#allocation3] ss:$2 sm:$0x3]  ;;  %v1129_v51 = vld [vmem:[#allocation3 + $0x1] ss:$2 sm:$0x3]  ;;  %2083 = vset.pattern.permute.xlu1 %v2381_v39  ;;  %2084 = vset.pattern.permute.xlu0 %v2381_v39 }
 0x2fc   : > { %v1121_v52 = vrot.slane %v1112_v49, %v2586_v50  ;;  %v1138_v53 = vrot.slane %v1129_v51, %v2586_v50  ;;  %v1117_v54 = vrot.slane %v1112_v49, %v2565_v3  ;;  %v2097_v58 = vld [vmem:[#allocation15 + $0x48] sm:$0xff]   ;;  %v1134_v61 = vrot.slane %v1129_v51, %v2565_v3  ;;  %v2099_v8 = vld [vmem:[#allocation15 + $0x40] sm:$0xff]   ;;  %v1336_v39 = vld [vmem:[#allocation11] sm:$0x1] }
 0x2fd   : > { %1909 = vmatpush3.bf16.msra.mxu0 %v2088_v40  ;;  %v2098_v6 = vld [vmem:[#allocation15 + $0x8] sm:$0xff]   ;;  %v1107_v21 = vld [vmem:[%s2751_s7 + $0x1] sm:$0x1]  ;;  %v1109_v23 = vld [vmem:[%s2752_s8] sm:$0x1]  ;;  %v1352_v40 = vsub.s32 2, %v2562_v2 }
 0x2fe   : > { %1910 = vmatprep.subr.bf16.mxu0 %v2089_v41  ;;  %v1125_v56 = vmul.f32 %v1121_v52, %v2600_v10  ;;  %v1127_v57 = vmul.f32 %v1121_v52, %v2604_v15  ;;  %v1124_v62 = vmul.f32 %v1117_v54, %v2597_v1  ;;  %v1126_v63 = vmul.f32 %v1117_v54, %v2602_v13  ;;  %v2100_v15 = vld [vmem:[#allocation15] sm:$0xff]   ;;  %v1098_v12 = vld [vmem:[#allocation4] sm:$0x1]  ;;  %v1100_v16 = vld [vmem:[#allocation4 + $0x1] sm:$0x1] }
 0x2ff   : > { %v1099_v14 = vmul.f32 0.0625, %v1098_v12  ;;  %v1101_v1 = vmul.f32 0.0625, %v1100_v16  ;;  %v1860_v27 = vld [vmem:[%s2751_s7] ss:$0 sm:$0xff]  ;;  %v1356_v41 = vsub.s32 3, %v2562_v2  ;;  %vm1338_vm5 = vcmp.gt.f32.partialorder %v1336_v39, 0.0 }
 0x300   : > { %v1142_v59 = vadd.f32 %v1138_v53, %v1125_v56  ;;  %v1144_v60 = vadd.f32 %v1138_v53, %v1127_v57  ;;  %v1141_v9 = vadd.f32 %v1134_v61, %v1124_v62  ;;  %v1143_v10 = vadd.f32 %v1134_v61, %v1126_v63 }
 0x301   : > { %1911 = vmatpush3.bf16.msra.mxu0 %v2090_v42  ;;  %v1102_v17 = vmul.f32 %v1099_v14, %v1099_v14  ;;  %v1360_v42 = vsub.s32 4, %v2562_v2 }
 0x302   : > { %1912 = vmatprep.subr.bf16.mxu0 %v2091_v43  ;;  %v1146_v7 = vpack.c.bf16 %v1144_v60, %v1142_v59  ;;  %v1145_v11 = vpack.c.bf16 %v1143_v10, %v1141_v9  ;;  %v1364_v43 = vsub.s32 5, %v2562_v2 }
 0x303   : > { %v1103_v13 = vsub.f32 %v1101_v1, %v1102_v17 }
 0x304   : > { %1312 = vmatprep.mubr.bf16.mxu0 %v1146_v7 }
 0x305   : > { %1913 = vmatpush3.bf16.msra.mxu0 %v2092_v44  ;;  %v1104_v18 = vmax.f32 %v1103_v13, 0.0  ;;  %v1368_v44 = vsub.s32 6, %v2562_v2 }
 0x306   : > { %1914 = vmatprep.subr.bf16.mxu0 %v2093_v45  ;;  %v1372_v45 = vsub.s32 7, %v2562_v2 }
 0x307   : > { %v1105_v19 = vadd.f32 1e-05, %v1104_v18 }
 0x309   : > { %1915 = vmatpush3.bf16.msra.mxu0 %v2094_v47  ;;  %2101 = vrsqrt.f32 %v1105_v19 }
 0x30a   : > { %1916 = vmatprep.subr.bf16.mxu0 %v2095_v48 }
 0x30d   : > { %1917 = vmatpush3.bf16.msra.mxu0 %v2096_v55 }
 0x30e   : > { %1918 = vmatprep.subr.bf16.mxu0 %v2097_v58 }
 0x311   : > { %1919 = vmatpush3.bf16.msra.mxu0 %v2098_v6 }
 0x312   : > { %1920 = vmatprep.subr.bf16.mxu0 %v2099_v8 }
 0x315   : > { %1921 = vmatpush3.bf16.msra.mxu0 %v2100_v15 }
 0x316   : > { %v2102_v20 = vpop.eup %2101 }
 0x317   : > { %v1108_v22 = vmul.f32 %v2102_v20, %v1107_v21 }
 0x318   : > { %1313 = vmatmul.mubr.bf16.vlgmr.msra.gmra.mxu0 %v1145_v11 }
 0x319   : > { %v1110_v24 = vmul.f32 %v1109_v23, %v1108_v22 }
 0x31b   : > { %1111 = vst [vmem:[#allocation5] sm:$0x1] %v1110_v24 }
 0x322   : > { %v1877_v32 = vld [vmem:[#allocation5] ss:$0 sm:$0xff] }
 0x3d8   : > { %v1922_v25 = vpop.f32.mrf.mxu0 }
 0x3da   : > { %v1923_v26 = vpop.f32.mrf.mxu0 }
 0x3db   : > { %v1924_v28 = vadd.f32 %v1923_v26, %v1922_v25 }
 0x3dc   : > { %v1925_v29 = vpop.f32.mrf.mxu0 }
 0x3dd   : > { %v1315_v30 = vadd.f32 %v1924_v28, %v1860_v27 }
 0x3de   : > { %v1926_v31 = vpop.f32.mrf.mxu0 }
 0x3df   : > { %v1927_v33 = vadd.f32 %v1926_v31, %v1925_v29  ;;  %v1321_v34 = vmax.f32 %v1315_v30, 0.0 }
 0x3e1   : > { %v1318_v35 = vadd.f32 %v1927_v33, %v1860_v27  ;;  %v1330_v36 = vmul.f32 %v1877_v32, %v1321_v34  ;;  %v1511_v33 = vand.u32 127, %v471_v0 }
 0x3e3   : > { %v1322_v37 = vmax.f32 %v1318_v35, 0.0  ;;  %1332 = vadd.xlane.f32.xlu0 %v1330_v36  ;;  %v1514_v34 = vsub.s32 %v1511_v33, %v2562_v2 }
 0x3e5   : > { %v1331_v38 = vmul.f32 %v1877_v32, %v1322_v37 }
 0x3e7   : > { %1334 = vadd.xlane.f32.xlu0 %v1331_v38 }
 0x46c   : > { %v1333_v47 = vpop.xlane.xlu0 %1332 }
 0x46d   : > { %v1345_v48 = vrot.slane %v1333_v47, %v2565_v3  ;;  %v1349_v49 = vrot.slane %v1333_v47, %v2586_v50  ;;  %v1353_v51 = vrot.slane %v1333_v47, %v1352_v40  ;;  %v1357_v52 = vrot.slane %v1333_v47, %v1356_v41 }
 0x46e   : > { %v1361_v53 = vrot.slane %v1333_v47, %v1360_v42  ;;  %v1365_v54 = vrot.slane %v1333_v47, %v1364_v43  ;;  %v1369_v55 = vrot.slane %v1333_v47, %v1368_v44  ;;  %v1373_v56 = vrot.slane %v1333_v47, %v1372_v45 }
 0x46f   : > { %v1406_v57 = vcombine.low %v1345_v48, %v1349_v49  ;;  %v1407_v58 = vcombine.low %v1353_v51, %v1357_v52 }
 0x470   : > { %v1335_v59 = vpop.xlane.xlu0 %1334  ;;  %v1408_v60 = vcombine.low %v1361_v53, %v1365_v54  ;;  %v1409_v61 = vcombine.low %v1369_v55, %v1373_v56 }
 0x471   : > { %v1416_v62 = vrot.slane %v1406_v57, %v2581_v46  ;;  %v1423_v63 = vrot.slane %v1407_v58, %v2581_v46  ;;  %v1377_v6 = vrot.slane %v1335_v59, %v2565_v3  ;;  %v1381_v7 = vrot.slane %v1335_v59, %v2586_v50 }
 0x472   : > { %v1430_v8 = vrot.slane %v1408_v60, %v2581_v46  ;;  %v1437_v9 = vrot.slane %v1409_v61, %v2581_v46  ;;  %v1385_v10 = vrot.slane %v1335_v59, %v1352_v40  ;;  %v1389_v15 = vrot.slane %v1335_v59, %v1356_v41  ;;  %v1337_v40 = vld [vmem:[#allocation11 + $0x1] sm:$0x1] }
 0x473   : > { %v1438_v11 = vcombine.low %v1416_v62, %v1423_v63  ;;  %v1393_v12 = vrot.slane %v1335_v59, %v1360_v42  ;;  %v1397_v14 = vrot.slane %v1335_v59, %v1364_v43  ;;  %v1401_v16 = vrot.slane %v1335_v59, %v1368_v44 }
 0x474   : > { %v1439_v1 = vcombine.low %v1430_v8, %v1437_v9  ;;  %v1405_v17 = vrot.slane %v1335_v59, %v1372_v45  ;;  %v1455_v13 = vcombine.low %v1377_v6, %v1381_v7  ;;  %v1456_v18 = vcombine.low %v1385_v10, %v1389_v15 }
 0x475   : > { %v1446_v19 = vrot.slane %v1438_v11, %v2581_v46  ;;  %v1457_v20 = vcombine.low %v1393_v12, %v1397_v14  ;;  %vm1339_vm6 = vcmp.gt.f32.partialorder %v1337_v40, 0.0 }
 0x476   : > { %v1453_v21 = vrot.slane %v1439_v1, %v2581_v46  ;;  %v1458_v22 = vcombine.low %v1401_v16, %v1405_v17  ;;  %v1465_v23 = vrot.slane %v1455_v13, %v2581_v46  ;;  %v1472_v24 = vrot.slane %v1456_v18, %v2581_v46 }
 0x477   : > { %v1479_v25 = vrot.slane %v1457_v20, %v2581_v46 }
 0x478   : > { %v1454_v26 = vcombine.low %v1446_v19, %v1453_v21  ;;  %v1486_v27 = vrot.slane %v1458_v22, %v2581_v46  ;;  %v1487_v28 = vcombine.low %v1465_v23, %v1472_v24 }
 0x47a   : > { %1505 = vperm.xlu1 %2083, %v1454_v26   ;;  %v1488_v29 = vcombine.low %v1479_v25, %v1486_v27  ;;  %v1495_v30 = vrot.slane %v1487_v28, %v2581_v46 }
 0x47c   : > { %v1502_v31 = vrot.slane %v1488_v29, %v2581_v46 }
 0x47e   : > { %v1503_v32 = vcombine.low %v1495_v30, %v1502_v31 }
 0x480   : > { %1508 = vperm.xlu1 %2083, %v1503_v32  }
 0x4f5   : > { %v1506_v35 = vpop.permute.xlu1 %1505 }
 0x4f6   : > { %v1515_v36 = vrot.slane %v1506_v35, %v1514_v34 }
 0x4f8   : > { %v1526_v37 = vrot.slane %v1515_v36, %v2581_v46 }
 0x4fa   : > { %v1533_v42 = vrot.slane %v1526_v37, %v2581_v46 }
 0x4fb   : > { %v1509_v38 = vpop.permute.xlu1 %1508 }
 0x4fc   : > { %v1519_v41 = vrot.slane %v1509_v38, %v1514_v34  ;;  %v1550_v45 = vsel %vm1338_vm5, %v1533_v42, -1e+30 }
 0x4fe   : > { %v1540_v43 = vrot.slane %v1519_v41, %v2581_v46 }
 0x500   : > { %v1547_v44 = vrot.slane %v1540_v43, %v2581_v46 }
 0x502   : > { %v1551_v0 = vsel %vm1339_vm6, %v1547_v44, -1e+30 }
 0x503   : > { %v1554_v47 = vcombine.low %v1550_v45, %v1551_v0 }
 0x505   : > { %v1561_v2 = vrot.slane %v1554_v47, %v2581_v46 }
 0x507   : > { %v1568_v48 = vrot.slane %v1561_v2, %v2581_v46 }
 0x509   : > { %v1571_v49 = vsel %vm1570_vm7, %v1568_v48, -inf }
 0x50a   : > { %1572 = vmax.xlane.f32.xlu0 %v1571_v49 }
 0x593   : > { %v1573_v51 = vpop.xlane.xlu0 %1572 }
 0x594   : > { %v1578_v52 = vrot.slane %v1573_v51, %v2565_v3  ;;  %v1582_v53 = vrot.slane %v1573_v51, %v2586_v50 }
 0x596   : > { %v1585_v54 = vsub.f32 %v1550_v45, %v1578_v52  ;;  %v1586_v55 = vsub.f32 %v1551_v0, %v1582_v53 }
 0x598   : > { %v1587_v56 = vmul.f32 1.442695, %v1585_v54  ;;  %v1589_v57 = vmul.f32 1.442695, %v1586_v55 }
 0x59a   : > { %2103 = vpow2.f32 %v1587_v56 }
 0x59b   : > { %2105 = vpow2.f32 %v1589_v57 }
 0x5a7   : > { %v2104_v58 = vpop.eup %2103 }
 0x5a8   : > { %v2106_v59 = vpop.eup %2105 }
 0x5a9   : > { %v1593_v60 = vcombine.low %v2104_v58, %v2106_v59 }
 0x5ab   : > { %v1600_v61 = vrot.slane %v1593_v60, %v2581_v46 }
 0x5ad   : > { %v1607_v62 = vrot.slane %v1600_v61, %v2581_v46 }
 0x5af   : > { %v1609_v63 = vsel %vm1570_vm7, %v1607_v62, 0.0 }
 0x5b0   : > { %1610 = vadd.xlane.f32.xlu1 %v1609_v63 }
 0x639   : > { %v1611_v6 = vpop.xlane.xlu1 %1610 }
 0x63a   : > { %v1616_v7 = vrot.slane %v1611_v6, %v2565_v3  ;;  %v1620_v8 = vrot.slane %v1611_v6, %v2586_v50 }
 0x63c   : > { %2107 = vrcp.f32 %v1616_v7 }
 0x63d   : > { %2109 = vrcp.f32 %v1620_v8 }
 0x649   : > { %v2108_v9 = vpop.eup %2107 }
 0x64a   : > { %v2110_v10 = vpop.eup %2109  ;;  %v1624_v15 = vmul.f32 %v2108_v9, %v2104_v58 }
 0x64b   : > { %v1626_v11 = vmul.f32 %v2110_v10, %v2106_v59 }
 0x64c   : > { %v1633_v12 = vrot.slane %v1624_v15, %v2565_v3  ;;  %1628 = vst.msk [vmem:[#allocation18] sm:$0x1] %vm1627_vm8, %v1624_v15 }
 0x64d   : > { %1629 = vst.msk [vmem:[#allocation18 + $0x1] sm:$0x1] %vm1627_vm8, %v1626_v11  ;;  %v1640_v46 = vrot.slane %v1626_v11, %v2565_v3 }
 0x64e   : > { %1635 = vbcast.lane.b32.xlu0 %v1633_v12, 256 }
 0x652   : > { %1642 = vbcast.lane.b32.xlu0 %v1640_v46, 256 }
 0x6c0   : > { %v1636_v14 = vpop.permute.xlu0 %1635 }
 0x6c1   : > { %v1644_v16 = vmul.f32 %v1636_v14, %v2567_v4 }
 0x6c3   : > { %v1646_v50 = vsel %vm491_vm1, %v1644_v16, 0.0 }
 0x6c4   : > { %v1647_v1 = vrot.slane %v1646_v50, 4  ;;  %v1643_v17 = vpop.permute.xlu0 %1642 }
 0x6c5   : > { %v1645_v13 = vmul.f32 %v1643_v17, %v2569_v5 }
 0x6c6   : > { %v1648_v18 = vadd.f32 %v1647_v1, %v1646_v50 }
 0x6c7   : > { %v1653_v19 = vsel %vm491_vm1, %v1645_v13, 0.0 }
 0x6c8   : > { %v1649_v20 = vrot.slane %v1648_v18, 2  ;;  %v1654_v21 = vrot.slane %v1653_v19, 4 }
 0x6ca   : > { %v1650_v22 = vadd.f32 %v1649_v20, %v1648_v18  ;;  %v1655_v23 = vadd.f32 %v1654_v21, %v1653_v19 }
 0x6cc   : > { %v1651_v24 = vrot.slane %v1650_v22, 1  ;;  %v1656_v25 = vrot.slane %v1655_v23, 2 }
 0x6ce   : > { %v1652_v3 = vadd.f32 %v1651_v24, %v1650_v22  ;;  %v1657_v26 = vadd.f32 %v1656_v25, %v1655_v23 }
 0x6d0   : > { %1661 = vst.msk [vmem:[#allocation17] sm:$0x1] %vm1660_vm9, %v1652_v3  ;;  %v1658_v4 = vrot.slane %v1657_v26, 1 }
 0x6d2   : > { %v1659_v27 = vadd.f32 %v1658_v4, %v1657_v26 }
 0x6d4   : > { %1662 = vst.msk [vmem:[#allocation17 + $0x1] sm:$0x1] %vm1660_vm9, %v1659_v27 }
 0x6d5 PF: > { %s2762_s25 = sadd.s32 4294967295, %s2361_s15   ;;  %s2382_s19 = smov [#allocation17]  }
 0x6d6   : > { %p2709_p6 = scmp.eq.s32.totalorder %s2762_s25, 2  ;;  %s1672_s20 = sshll.u32 %s2382_s19, 4  ;;  %s1673_s20 = int_to_ptr.vmem [resolvable:$true] %s1672_s20 }
 0x6d7   : > { %s2267_s21 = scalar_lea.vmem %s1673_s20, 32  ;;  %p2274_p13 = scmp.lt.s32.totalorder %s1673_s20, %s1673_s20 }
 0x6d8   : > { %p2268_p10 = scmp.ne.s32.totalorder %s1673_s20, %s2267_s21  ;;  %p2275_p0 = scmp.lt.s32.totalorder %s2267_s21, %s2267_s21 }
 0x6da   : > { %p2269_p11 = pnand %p2268_p10, %p2709_p6  ;;  %p2276_p1 = por %p2275_p0, %p2274_p13 }
 0x6dc   : > { %p2270_p12 = pneg %p2269_p11 }
 0x6de   : > { %p2277_p4 = pnand %p2276_p1, %p2270_p12 }
 0x6e0   : > { %2280 = shalt.err (!%p2277_p4)
}
 0x6e1   : > { %s2383_s24 = smov 16   ;;  %s2384_s12 = smov 1  }
 0x6e2   : > { %1953 = dma.vmem_to_hbm [thread:$0]  (%p2709_p6), %s1673_s20, 32, %s2753_s9, [#allocation8], %s2383_s24, %s2383_s24, %s2384_s12  }
 0x6e3   : > { %s2385_s16 = smov [#allocation18]  }
 0x6e4   : > { %s1688_s17 = sshll.u32 %s2385_s16, 4  ;;  %s1689_s17 = int_to_ptr.vmem [resolvable:$true] %s1688_s17 }
 0x6e5   : > { %s2291_s13 = scalar_lea.vmem %s1689_s17, 32  ;;  %p2298_p2 = scmp.lt.s32.totalorder %s1689_s17, %s1689_s17 }
 0x6e6   : > { %p2292_p7 = scmp.ne.s32.totalorder %s1689_s17, %s2291_s13  ;;  %p2299_p3 = scmp.lt.s32.totalorder %s2291_s13, %s2291_s13 }
 0x6e8   : > { %p2293_p8 = pnand %p2292_p7, %p2709_p6  ;;  %p2300_p5 = por %p2299_p3, %p2298_p2 }
 0x6ea   : > { %p2294_p9 = pneg %p2293_p8 }
 0x6ec   : > { %p2301_p10 = pnand %p2300_p5, %p2294_p9 }
 0x6ee   : > { %2304 = shalt.err (!%p2301_p10)
}
 0x6ef   : > { %1955 = dma.vmem_to_hbm [thread:$0]  (%p2709_p6), %s1689_s17, 32, %s2754_s10, [#allocation19], %s2383_s24, %s2383_s24, %s2384_s12  }
 0x6f0   : > { %2344 = dma.done.wait (%p2709_p6), [#allocation8], 32  }
 0x6f1   : > { %2346 = vsyncadd (%p2709_p6), [#allocation8], 4294967264 }
 0x6f2   : > { %2348 = dma.done.wait (%p2709_p6), [#allocation19], 32  }
 0x6f3   : > { %2350 = vsyncadd (%p2709_p6), [#allocation19], 4294967264 }
 0x6f4 PF: > { %s27_s15 = sadd.s32 1, %s2361_s15   ;;  %s2764_s13 = smov %s2357_s14 }
 0x6f5   : > { %p24_p11 = scmp.ge.s32.totalorder %s27_s15, 5   ;;  %s2765_s14 = smov %s2767_s22 }
 0x6f7   :  { %26 = sbr.rel (!%p24_p11) target bundleno = 7 (0x7), region = 147 }
 0x6fc   :  { %1708 = vsyncpa [#allocation7], 1 }
 0x6fd   :  { %1710 = vsyncpa [#allocation7 + $0x1], 1 }
 0x6fe   :  { %1711 = vsyncpa [#allocation10], 1 }
 0x6ff   :  { %1712 = vsyncpa [#allocation13], 1 }
 0x700   :  { %1713 = vsyncpa [#allocation16], 1 }
 0x701   :  { %1714 = vsyncpa [#allocation8], 1 }
 0x702   :  { %1716 = vsyncpa [#allocation8 + $0x1], 1 }
 0x703   :  { %1717 = vsyncpa [#allocation19], 1 }

</bundles_post_ra>
